<compile_context>
chip_gen: v6e
topology: v6e:2x2x1
jax: 0.10.0
libtpu: 0.0.40
codegen_flags: <defaults>
</compile_context>

<pallas_src>
import math
import jax
import jax.numpy as jnp
from jax.experimental import pallas as pl
from jax.experimental.pallas import tpu as pltpu


def _layernorm(v, g, b, eps=1e-5):
    # f32 VPU math (v5e has no bf16 VALU/EUP); matches torch.nn.LayerNorm.
    mu = jnp.mean(v, axis=-1, keepdims=True)
    var = jnp.mean((v - mu) ** 2, axis=-1, keepdims=True)
    return (v - mu) * jax.lax.rsqrt(var + eps) * g + b


def make_encoder_kernel(num_heads, head_dim, seq_len, q_tile, kv_tile):
    H, hd, S, TQ, TK = num_heads, head_dim, seq_len, q_tile, kv_tile
    n_q = S // TQ
    n_kv = S // TK

    def kernel(x_ref,
               wq_ref, wk_ref, wv_ref, bq_ref, bk_ref, bv_ref,
               wo_ref, bo_ref,
               g1_ref, be1_ref,
               w1_ref, b1_ref, w2_ref, b2_ref,
               g2_ref, be2_ref,
               o_ref,
               k_scr, v_scr):
        t = pl.program_id(1)

        # ---- K/V projection: once per batch element, persisted head-major in VMEM
        #      scratch (requires the t axis to be sequential / "arbitrary").
        @pl.when(t == 0)
        def _():
            xkv = x_ref[0].astype(jnp.bfloat16)                           # (S, E)
            k = jnp.dot(xkv, wk_ref[...], preferred_element_type=jnp.float32) + bk_ref[...]
            v = jnp.dot(xkv, wv_ref[...], preferred_element_type=jnp.float32) + bv_ref[...]
            k_scr[...] = jnp.transpose(k.reshape(S, H, hd), (1, 0, 2)).astype(jnp.bfloat16)
            v_scr[...] = jnp.transpose(v.reshape(S, H, hd), (1, 0, 2)).astype(jnp.bfloat16)

        # ---- query / residual tile sliced from the resident full-sequence block.
        if n_q == 1:
            xq = x_ref[0]                                                 # (S, E) == (TQ, E)
        else:
            q_start = pl.multiple_of(t * TQ, TQ)
            xq = x_ref[0, pl.ds(q_start, TQ), :]                          # (TQ, E) f32
        xq_bf = xq.astype(jnp.bfloat16)

        # Q projection (1/sqrt(head_dim) already folded into wq/bq).
        q = jnp.dot(xq_bf, wq_ref[...], preferred_element_type=jnp.float32) + bq_ref[...]
        qh = jnp.transpose(q.reshape(TQ, H, hd), (1, 0, 2)).astype(jnp.bfloat16)  # (H,TQ,hd)

        # ---- KV-blocked multi-head attention (online softmax, heads batched).
        def scores(kv):
            kb = k_scr[:, kv * TK:(kv + 1) * TK, :]                       # (H, TK, hd) bf16
            return jnp.einsum("hqd,hkd->hqk", qh, kb,
                              preferred_element_type=jnp.float32)         # (H, TQ, TK) f32

        def pv(kv, p):
            vb = v_scr[:, kv * TK:(kv + 1) * TK, :]                       # (H, TK, hd) bf16
            return jnp.einsum("hqk,hkd->hqd", p.astype(jnp.bfloat16), vb,
                              preferred_element_type=jnp.float32)         # (H, TQ, hd) f32

        s = scores(0)
        m = jnp.max(s, axis=-1, keepdims=True)
        p = jnp.exp(s - m)
        l = jnp.sum(p, axis=-1, keepdims=True)
        acc = pv(0, p)
        # TODO(synk): for very long S, move this loop onto a third grid axis
        # (or lax.fori_loop) instead of a static unroll.
        for kv in range(1, n_kv):
            s = scores(kv)
            m_new = jnp.maximum(m, jnp.max(s, axis=-1, keepdims=True))
            alpha = jnp.exp(m - m_new)
            p = jnp.exp(s - m_new)
            l = alpha * l + jnp.sum(p, axis=-1, keepdims=True)
            acc = alpha * acc + pv(kv, p)
            m = m_new

        # Exact reciprocal: denominator is only (H, TQ, 1), so this is nearly free.
        ctx = acc * pl.reciprocal(l, approx=False)                        # (H, TQ, hd) f32

        attn = jnp.transpose(ctx, (1, 0, 2)).reshape(TQ, H * hd)          # (TQ, E)
        attn = jnp.dot(attn.astype(jnp.bfloat16), wo_ref[...],
                       preferred_element_type=jnp.float32) + bo_ref[...]

        # ---- residual + LayerNorm 1
        y1 = _layernorm(xq + attn, g1_ref[...], be1_ref[...])             # (TQ, E) f32

        # ---- feed-forward: Linear -> ReLU -> Linear
        h1 = jnp.dot(y1.astype(jnp.bfloat16), w1_ref[...],
                     preferred_element_type=jnp.float32) + b1_ref[...]
        h1 = jnp.maximum(h1, 0.0)
        h2 = jnp.dot(h1.astype(jnp.bfloat16), w2_ref[...],
                     preferred_element_type=jnp.float32) + b2_ref[...]

        # ---- residual + LayerNorm 2
        out = _layernorm(y1 + h2, g2_ref[...], be2_ref[...])
        o_ref[0] = out.astype(o_ref.dtype)

    return kernel


def transformer_encoder(x, kparams, num_heads):
    """x: (B, S, E) float32.  kparams: kernel-layout params from prepare_kernel_params
    (bf16 matmul weights pre-transposed to (in, out), scale folded into wq/bq,
    f32 (1, n) biases / LayerNorm params)."""
    B, S, E = x.shape
    D = kparams["w1"].shape[1]
    H = num_heads
    hd = E // H

    # Per-generation VMEM capacity (v5e/v6e: 128 MiB, v7x: 64 MiB per TC).
    try:
        vmem_cap = int(pltpu.get_tpu_info().vmem_capacity_bytes)
    except Exception:
        vmem_cap = 128 * 2 ** 20

    # Query tile: 256 where VMEM allows (v5e/v6e), 128 on tighter-VMEM parts (v7x),
    # full sequence for small / non-128-divisible S.
    # TODO(synk): pad S (and mask padded keys) instead of falling back to TQ = S.
    big_vmem = vmem_cap >= 100 * 2 ** 20
    if big_vmem and S % 256 == 0 and S >= 512:
        TQ = 256
    elif S % 128 == 0:
        TQ = 128
    else:
        TQ = S
    n_q = S // TQ

    # KV tile for the online-softmax attention loop.
    TK = 512 if (S % 512 == 0 and S > 512) else S

    kernel = make_encoder_kernel(H, hd, S, TQ, TK)

    # Explicit VMEM budget: single-buffered bf16 weights, double-buffered in/out
    # blocks, lane-padded bf16 K/V scratch, f32/bf16 attention + FFN tiles.
    bf2, f4 = 2, 4
    weights = bf2 * (4 * E * E + 2 * E * D)
    biases = f4 * (10 * E + D)
    x_blocks = 2 * f4 * S * E
    o_blocks = 2 * f4 * TQ * E
    kv_scr = 2 * bf2 * H * S * max(hd, 128)
    act = (f4 * (3 * TQ * E + 3 * H * TQ * TK + 2 * H * TQ * hd + TQ * D + 2 * S * E)
           + bf2 * (S * E + TQ * E + H * TQ * TK))
    vmem_needed = weights + biases + x_blocks + o_blocks + kv_scr + act
    vmem_limit = int(max(4 * 2 ** 20, min((vmem_cap * 3) // 4, int(1.5 * vmem_needed))))

    args = (x,
            kparams["wq"], kparams["wk"], kparams["wv"],
            kparams["bq"], kparams["bk"], kparams["bv"],
            kparams["wo"], kparams["bo"],
            kparams["g1"], kparams["be1"],
            kparams["w1"], kparams["b1"], kparams["w2"], kparams["b2"],
            kparams["g2"], kparams["be2"])

    def run(single_buffer_weights):
        def wspec(shape):
            # Grid-invariant weight / bias tile; single-buffered when supported
            # (block index never changes, double-buffering only wastes VMEM).
            if single_buffer_weights:
                return pl.BlockSpec(shape, lambda b, t: (0, 0),
                                    pipeline_mode=pl.Buffered(1))
            return pl.BlockSpec(shape, lambda b, t: (0, 0))

        in_specs = [
            pl.BlockSpec((1, S, E), lambda b, t: (b, 0, 0)),    # x: full sequence (f32)
            wspec((E, E)), wspec((E, E)), wspec((E, E)),        # wq, wk, wv (bf16)
            wspec((1, E)), wspec((1, E)), wspec((1, E)),        # bq, bk, bv
            wspec((E, E)), wspec((1, E)),                       # wo, bo
            wspec((1, E)), wspec((1, E)),                       # ln1 gamma, beta
            wspec((E, D)), wspec((1, D)),                       # w1, b1
            wspec((D, E)), wspec((1, E)),                       # w2, b2
            wspec((1, E)), wspec((1, E)),                       # ln2 gamma, beta
        ]

        return pl.pallas_call(
            kernel,
            out_shape=jax.ShapeDtypeStruct((B, S, E), x.dtype),
            grid_spec=pltpu.PrefetchScalarGridSpec(
                num_scalar_prefetch=0,
                grid=(B, n_q),
                in_specs=in_specs,
                # TODO(synk): pad E to a multiple of 128 for lane-dense stores.
                out_specs=pl.BlockSpec((1, TQ, E), lambda b, t: (b, t, 0)),
                scratch_shapes=[pltpu.VMEM((H, S, hd), jnp.bfloat16),
                                pltpu.VMEM((H, S, hd), jnp.bfloat16)]),
            compiler_params=pltpu.CompilerParams(
                # t MUST be "arbitrary": K/V scratch is filled at t == 0 and reused.
                # b stays "parallel" so v7x's two TensorCores split the batch.
                dimension_semantics=("parallel", "arbitrary"),
                vmem_limit_bytes=vmem_limit),
        )(*args)

    try:
        return run(single_buffer_weights=True)
    except Exception:
        # Fallback for jax versions without pl.Buffered / pipeline_mode support.
        return run(single_buffer_weights=False)


def init_params(key, embed_dim, dense_dim):
    """Deterministic synthetic parameters in PyTorch layout (Linear weights are (out, in))."""
    E, D = embed_dim, dense_dim
    ks = jax.random.split(key, 8)
    s = 0.02
    in_proj_w = jax.random.normal(ks[0], (3 * E, E), jnp.float32) * s
    in_proj_b = jax.random.normal(ks[1], (3 * E,), jnp.float32) * s
    return dict(
        wq=in_proj_w[0:E], wk=in_proj_w[E:2 * E], wv=in_proj_w[2 * E:],
        bq=in_proj_b[0:E], bk=in_proj_b[E:2 * E], bv=in_proj_b[2 * E:],
        wo=jax.random.normal(ks[2], (E, E), jnp.float32) * s,
        bo=jax.random.normal(ks[3], (E,), jnp.float32) * s,
        w1=jax.random.normal(ks[4], (D, E), jnp.float32) * s,
        b1=jax.random.normal(ks[5], (D,), jnp.float32) * s,
        w2=jax.random.normal(ks[6], (E, D), jnp.float32) * s,
        b2=jax.random.normal(ks[7], (E,), jnp.float32) * s,
        g1=jnp.ones((E,), jnp.float32), be1=jnp.zeros((E,), jnp.float32),
        g2=jnp.ones((E,), jnp.float32), be2=jnp.zeros((E,), jnp.float32),
    )


def prepare_kernel_params(p, num_heads):
    """One-time transform to kernel layout: transpose Linear weights to (in, out),
    fold the 1/sqrt(head_dim) attention scale into wq/bq, cast matmul weights to
    bf16; biases / LayerNorm params stay f32, reshaped to (1, n)."""
    E = p["wq"].shape[0]
    scale = 1.0 / math.sqrt(E // num_heads)
    bf = lambda w: w.astype(jnp.bfloat16)
    r = lambda v: v.reshape(1, -1).astype(jnp.float32)
    return dict(
        wq=bf(p["wq"].T * scale), bq=r(p["bq"] * scale),
        wk=bf(p["wk"].T), bk=r(p["bk"]),
        wv=bf(p["wv"].T), bv=r(p["bv"]),
        wo=bf(p["wo"].T), bo=r(p["bo"]),
        w1=bf(p["w1"].T), b1=r(p["b1"]),
        w2=bf(p["w2"].T), b2=r(p["b2"]),
        g1=r(p["g1"]), be1=r(p["be1"]), g2=r(p["g2"]), be2=r(p["be2"]),
    )


def reference(x, p, num_heads):
    """Pure-JAX f32 reference mirroring nn.MultiheadAttention(batch_first=True) +
    dense_proj + the two LayerNorms, using unfolded PyTorch-layout parameters."""
    B, S, E = x.shape
    hd = E // num_heads
    q = x @ p["wq"].T + p["bq"]
    k = x @ p["wk"].T + p["bk"]
    v = x @ p["wv"].T + p["bv"]
    q = q.reshape(B, S, num_heads, hd).transpose(0, 2, 1, 3)
    k = k.reshape(B, S, num_heads, hd).transpose(0, 2, 1, 3)
    v = v.reshape(B, S, num_heads, hd).transpose(0, 2, 1, 3)
    s = jnp.einsum("bhqd,bhkd->bhqk", q, k) / math.sqrt(hd)
    a = jax.nn.softmax(s, axis=-1)
    o = jnp.einsum("bhqk,bhkd->bhqd", a, v).transpose(0, 2, 1, 3).reshape(B, S, E)
    attn = o @ p["wo"].T + p["bo"]

    def ln(v_, g, b):
        mu = jnp.mean(v_, -1, keepdims=True)
        var = jnp.mean((v_ - mu) ** 2, -1, keepdims=True)
        return (v_ - mu) / jnp.sqrt(var + 1e-5) * g + b

    y1 = ln(x + attn, p["g1"], p["be1"])
    ff = jnp.maximum(y1 @ p["w1"].T + p["b1"], 0.0) @ p["w2"].T + p["b2"]
    return ln(y1 + ff, p["g2"], p["be2"])


if __name__ == "__main__":
    B, S, E, D, H = 2, 8, 32, 64, 4
    key = jax.random.PRNGKey(0)
    kx, kp = jax.random.split(key)
    x = jax.random.normal(kx, (B, S, E), jnp.float32)

    params = init_params(kp, E, D)                  # PyTorch-layout f32
    kparams = prepare_kernel_params(params, H)      # one-time kernel-layout transform

    out = transformer_encoder(x, kparams, H)
    out = jax.block_until_ready(out)

    ref = reference(x, params, H)
    assert out.shape == (B, S, E)
    max_err = float(jnp.abs(out - ref).max())
    # bf16 MXU operands vs f32 reference -> loosened tolerance.
    assert jnp.allclose(out, ref, atol=2e-2, rtol=2e-2), max_err
    print("KERNEL_OK")
</pallas_src>

<mosaic_0001>
module attributes {stable_mosaic.version = 11 : i64} {
  func.func @kernel(%arg0: i32, %arg1: i32, %arg2: memref<1x8x32xf32, #tpu.memory_space<vmem>>, %arg3: memref<32x32xbf16, #tpu.memory_space<vmem>>, %arg4: memref<32x32xbf16, #tpu.memory_space<vmem>>, %arg5: memref<32x32xbf16, #tpu.memory_space<vmem>>, %arg6: memref<1x32xf32, #tpu.memory_space<vmem>>, %arg7: memref<1x32xf32, #tpu.memory_space<vmem>>, %arg8: memref<1x32xf32, #tpu.memory_space<vmem>>, %arg9: memref<32x32xbf16, #tpu.memory_space<vmem>>, %arg10: memref<1x32xf32, #tpu.memory_space<vmem>>, %arg11: memref<1x32xf32, #tpu.memory_space<vmem>>, %arg12: memref<1x32xf32, #tpu.memory_space<vmem>>, %arg13: memref<32x64xbf16, #tpu.memory_space<vmem>>, %arg14: memref<1x64xf32, #tpu.memory_space<vmem>>, %arg15: memref<64x32xbf16, #tpu.memory_space<vmem>>, %arg16: memref<1x32xf32, #tpu.memory_space<vmem>>, %arg17: memref<1x32xf32, #tpu.memory_space<vmem>>, %arg18: memref<1x32xf32, #tpu.memory_space<vmem>>, %arg19: memref<1x8x32xf32, #tpu.memory_space<vmem>>, %arg20: memref<4x8x8xbf16, #tpu.memory_space<vmem>>, %arg21: memref<4x8x8xbf16, #tpu.memory_space<vmem>>) attributes {dimension_semantics = [#tpu.dimension_semantics<parallel>, #tpu.dimension_semantics<arbitrary>], iteration_bounds = array<i64: 2, 1>, scalar_prefetch = 0 : i64, scratch_operands = 2 : i64, tpu.core_type = #tpu.core_type<tc>, window_params = [{transform_indices = @transform_0, window_bounds = array<i64: 1, 8, 32>}, {pipeline_mode = #tpu.pipeline_mode<synchronous>, transform_indices = @transform_1, window_bounds = array<i64: 32, 32>}, {pipeline_mode = #tpu.pipeline_mode<synchronous>, transform_indices = @transform_2, window_bounds = array<i64: 32, 32>}, {pipeline_mode = #tpu.pipeline_mode<synchronous>, transform_indices = @transform_3, window_bounds = array<i64: 32, 32>}, {pipeline_mode = #tpu.pipeline_mode<synchronous>, transform_indices = @transform_4, window_bounds = array<i64: 1, 32>}, {pipeline_mode = #tpu.pipeline_mode<synchronous>, transform_indices = @transform_5, window_bounds = array<i64: 1, 32>}, {pipeline_mode = #tpu.pipeline_mode<synchronous>, transform_indices = @transform_6, window_bounds = array<i64: 1, 32>}, {pipeline_mode = #tpu.pipeline_mode<synchronous>, transform_indices = @transform_7, window_bounds = array<i64: 32, 32>}, {pipeline_mode = #tpu.pipeline_mode<synchronous>, transform_indices = @transform_8, window_bounds = array<i64: 1, 32>}, {pipeline_mode = #tpu.pipeline_mode<synchronous>, transform_indices = @transform_9, window_bounds = array<i64: 1, 32>}, {pipeline_mode = #tpu.pipeline_mode<synchronous>, transform_indices = @transform_10, window_bounds = array<i64: 1, 32>}, {pipeline_mode = #tpu.pipeline_mode<synchronous>, transform_indices = @transform_11, window_bounds = array<i64: 32, 64>}, {pipeline_mode = #tpu.pipeline_mode<synchronous>, transform_indices = @transform_12, window_bounds = array<i64: 1, 64>}, {pipeline_mode = #tpu.pipeline_mode<synchronous>, transform_indices = @transform_13, window_bounds = array<i64: 64, 32>}, {pipeline_mode = #tpu.pipeline_mode<synchronous>, transform_indices = @transform_14, window_bounds = array<i64: 1, 32>}, {pipeline_mode = #tpu.pipeline_mode<synchronous>, transform_indices = @transform_15, window_bounds = array<i64: 1, 32>}, {pipeline_mode = #tpu.pipeline_mode<synchronous>, transform_indices = @transform_16, window_bounds = array<i64: 1, 32>}, {transform_indices = @transform_17, window_bounds = array<i64: 1, 8, 32>}]} {
    %c0_i32 = arith.constant 0 : i32
    %0 = arith.cmpi eq, %arg1, %c0_i32 : i32
    %1 = arith.extui %0 : i1 to i32
    %c0_i32_0 = arith.constant 0 : i32
    %2 = arith.cmpi ne, %1, %c0_i32_0 : i32
    scf.if %2 {
      %c0_54 = arith.constant 0 : index
      %c0_55 = arith.constant 0 : index
      %c0_56 = arith.constant 0 : index
      %104 = vector.load %arg2[%c0_54, %c0_55, %c0_56] : memref<1x8x32xf32, #tpu.memory_space<vmem>>, vector<1x8x32xf32>
      %105 = vector.shape_cast %104 : vector<1x8x32xf32> to vector<8x32xf32>
      %106 = arith.truncf %105 : vector<8x32xf32> to vector<8x32xbf16>
      %c0_57 = arith.constant 0 : index
      %c0_58 = arith.constant 0 : index
      %107 = vector.load %arg4[%c0_57, %c0_58] : memref<32x32xbf16, #tpu.memory_space<vmem>>, vector<32x32xbf16>
      %cst_59 = arith.constant dense<0.000000e+00> : vector<8x32xf32>
      %108 = tpu.matmul %106, %107, %cst_59 {dimension_numbers = #tpu.dot_dimension_numbers<[1], [0], [0], [1], [0, 0, 1, 1], [], []>} : vector<8x32xbf16>, vector<32x32xbf16>, vector<8x32xf32> -> vector<8x32xf32>
      %c0_60 = arith.constant 0 : index
      %c0_61 = arith.constant 0 : index
      %109 = vector.load %arg7[%c0_60, %c0_61] : memref<1x32xf32, #tpu.memory_space<vmem>>, vector<1x32xf32>
      %110 = vector.broadcast %109 : vector<1x32xf32> to vector<8x32xf32>
      %111 = arith.addf %108, %110 : vector<8x32xf32>
      %c0_62 = arith.constant 0 : index
      %c0_63 = arith.constant 0 : index
      %112 = vector.load %arg5[%c0_62, %c0_63] : memref<32x32xbf16, #tpu.memory_space<vmem>>, vector<32x32xbf16>
      %cst_64 = arith.constant dense<0.000000e+00> : vector<8x32xf32>
      %113 = tpu.matmul %106, %112, %cst_64 {dimension_numbers = #tpu.dot_dimension_numbers<[1], [0], [0], [1], [0, 0, 1, 1], [], []>} : vector<8x32xbf16>, vector<32x32xbf16>, vector<8x32xf32> -> vector<8x32xf32>
      %c0_65 = arith.constant 0 : index
      %c0_66 = arith.constant 0 : index
      %114 = vector.load %arg8[%c0_65, %c0_66] : memref<1x32xf32, #tpu.memory_space<vmem>>, vector<1x32xf32>
      %115 = vector.broadcast %114 : vector<1x32xf32> to vector<8x32xf32>
      %116 = arith.addf %113, %115 : vector<8x32xf32>
      %117 = vector.shape_cast %111 : vector<8x32xf32> to vector<8x4x8xf32>
      %118 = tpu.transpose %117, [1, 0, 2] : vector<8x4x8xf32> -> vector<4x8x8xf32>
      %119 = arith.truncf %118 : vector<4x8x8xf32> to vector<4x8x8xbf16>
      %c0_67 = arith.constant 0 : index
      %c0_68 = arith.constant 0 : index
      %c0_69 = arith.constant 0 : index
      %120 = vector.load %arg20[%c0_67, %c0_68, %c0_69] : memref<4x8x8xbf16, #tpu.memory_space<vmem>>, vector<4x8x8xbf16>
      tpu.vector_store %arg20[%c0_67, %c0_68, %c0_69], %119 {strides = array<i32>} : memref<4x8x8xbf16, #tpu.memory_space<vmem>>, vector<4x8x8xbf16>,
      %121 = vector.shape_cast %116 : vector<8x32xf32> to vector<8x4x8xf32>
      %122 = tpu.transpose %121, [1, 0, 2] : vector<8x4x8xf32> -> vector<4x8x8xf32>
      %123 = arith.truncf %122 : vector<4x8x8xf32> to vector<4x8x8xbf16>
      %c0_70 = arith.constant 0 : index
      %c0_71 = arith.constant 0 : index
      %c0_72 = arith.constant 0 : index
      %124 = vector.load %arg21[%c0_70, %c0_71, %c0_72] : memref<4x8x8xbf16, #tpu.memory_space<vmem>>, vector<4x8x8xbf16>
      tpu.vector_store %arg21[%c0_70, %c0_71, %c0_72], %123 {strides = array<i32>} : memref<4x8x8xbf16, #tpu.memory_space<vmem>>, vector<4x8x8xbf16>,
    } else {
    }
    %c0 = arith.constant 0 : index
    %c0_1 = arith.constant 0 : index
    %c0_2 = arith.constant 0 : index
    %3 = vector.load %arg2[%c0, %c0_1, %c0_2] : memref<1x8x32xf32, #tpu.memory_space<vmem>>, vector<1x8x32xf32>
    %4 = vector.shape_cast %3 : vector<1x8x32xf32> to vector<8x32xf32>
    %5 = arith.truncf %4 : vector<8x32xf32> to vector<8x32xbf16>
    %c0_3 = arith.constant 0 : index
    %c0_4 = arith.constant 0 : index
    %6 = vector.load %arg3[%c0_3, %c0_4] : memref<32x32xbf16, #tpu.memory_space<vmem>>, vector<32x32xbf16>
    %cst = arith.constant dense<0.000000e+00> : vector<8x32xf32>
    %7 = tpu.matmul %5, %6, %cst {dimension_numbers = #tpu.dot_dimension_numbers<[1], [0], [0], [1], [0, 0, 1, 1], [], []>} : vector<8x32xbf16>, vector<32x32xbf16>, vector<8x32xf32> -> vector<8x32xf32>
    %c0_5 = arith.constant 0 : index
    %c0_6 = arith.constant 0 : index
    %8 = vector.load %arg6[%c0_5, %c0_6] : memref<1x32xf32, #tpu.memory_space<vmem>>, vector<1x32xf32>
    %9 = vector.broadcast %8 : vector<1x32xf32> to vector<8x32xf32>
    %10 = arith.addf %7, %9 : vector<8x32xf32>
    %11 = vector.shape_cast %10 : vector<8x32xf32> to vector<8x4x8xf32>
    %12 = tpu.transpose %11, [1, 0, 2] : vector<8x4x8xf32> -> vector<4x8x8xf32>
    %13 = arith.truncf %12 : vector<4x8x8xf32> to vector<4x8x8xbf16>
    %c0_7 = arith.constant 0 : index
    %c0_8 = arith.constant 0 : index
    %c0_9 = arith.constant 0 : index
    %14 = vector.load %arg20[%c0_7, %c0_8, %c0_9] : memref<4x8x8xbf16, #tpu.memory_space<vmem>>, vector<4x8x8xbf16>
    "tpu.trace_start"() <{level = 10 : i32, message = "hqd,hkd->hqk"}> : () -> ()
    %cst_10 = arith.constant dense<0.000000e+00> : vector<4x8x8xf32>
    %15 = tpu.matmul %13, %14, %cst_10 {dimension_numbers = #tpu.dot_dimension_numbers<[2], [2], [1], [1], [0, 0, 0, 1, 1, 1], [0], [0]>} : vector<4x8x8xbf16>, vector<4x8x8xbf16>, vector<4x8x8xf32> -> vector<4x8x8xf32>
    "tpu.trace_stop"() : () -> ()
    %cst_11 = arith.constant dense<0xFF800000> : vector<4x8xf32>
    %16 = vector.multi_reduction <maximumf>, %15, %cst_11 [2] : vector<4x8x8xf32> to vector<4x8xf32>
    %17 = vector.shape_cast %16 : vector<4x8xf32> to vector<4x8x1xf32>
    %18 = vector.broadcast %17 : vector<4x8x1xf32> to vector<4x8x8xf32>
    %19 = arith.subf %15, %18 : vector<4x8x8xf32>
    %20 = math.exp %19 : vector<4x8x8xf32>
    %cst_12 = arith.constant dense<0.000000e+00> : vector<4x8xf32>
    %21 = vector.multi_reduction <add>, %20, %cst_12 [2] : vector<4x8x8xf32> to vector<4x8xf32>
    %22 = vector.shape_cast %21 : vector<4x8xf32> to vector<4x8x1xf32>
    %c0_13 = arith.constant 0 : index
    %c0_14 = arith.constant 0 : index
    %c0_15 = arith.constant 0 : index
    %23 = vector.load %arg21[%c0_13, %c0_14, %c0_15] : memref<4x8x8xbf16, #tpu.memory_space<vmem>>, vector<4x8x8xbf16>
    %24 = arith.truncf %20 : vector<4x8x8xf32> to vector<4x8x8xbf16>
    "tpu.trace_start"() <{level = 10 : i32, message = "hqk,hkd->hqd"}> : () -> ()
    %cst_16 = arith.constant dense<0.000000e+00> : vector<4x8x8xf32>
    %25 = tpu.matmul %24, %23, %cst_16 {dimension_numbers = #tpu.dot_dimension_numbers<[2], [1], [1], [2], [0, 0, 0, 1, 1, 2], [0], [0]>} : vector<4x8x8xbf16>, vector<4x8x8xbf16>, vector<4x8x8xf32> -> vector<4x8x8xf32>
    "tpu.trace_stop"() : () -> ()
    %26 = tpu.reciprocal %22 : vector<4x8x1xf32> -> vector<4x8x1xf32>
    %27 = vector.broadcast %26 : vector<4x8x1xf32> to vector<4x8x8xf32>
    %28 = arith.mulf %25, %27 : vector<4x8x8xf32>
    %29 = tpu.transpose %28, [1, 0, 2] : vector<4x8x8xf32> -> vector<8x4x8xf32>
    %30 = vector.shape_cast %29 : vector<8x4x8xf32> to vector<8x32xf32>
    %31 = arith.truncf %30 : vector<8x32xf32> to vector<8x32xbf16>
    %c0_17 = arith.constant 0 : index
    %c0_18 = arith.constant 0 : index
    %32 = vector.load %arg9[%c0_17, %c0_18] : memref<32x32xbf16, #tpu.memory_space<vmem>>, vector<32x32xbf16>
    %cst_19 = arith.constant dense<0.000000e+00> : vector<8x32xf32>
    %33 = tpu.matmul %31, %32, %cst_19 {dimension_numbers = #tpu.dot_dimension_numbers<[1], [0], [0], [1], [0, 0, 1, 1], [], []>} : vector<8x32xbf16>, vector<32x32xbf16>, vector<8x32xf32> -> vector<8x32xf32>
    %c0_20 = arith.constant 0 : index
    %c0_21 = arith.constant 0 : index
    %34 = vector.load %arg10[%c0_20, %c0_21] : memref<1x32xf32, #tpu.memory_space<vmem>>, vector<1x32xf32>
    %35 = vector.broadcast %34 : vector<1x32xf32> to vector<8x32xf32>
    %36 = arith.addf %33, %35 : vector<8x32xf32>
    %37 = arith.addf %4, %36 : vector<8x32xf32>
    %c0_22 = arith.constant 0 : index
    %c0_23 = arith.constant 0 : index
    %38 = vector.load %arg11[%c0_22, %c0_23] : memref<1x32xf32, #tpu.memory_space<vmem>>, vector<1x32xf32>
    %c0_24 = arith.constant 0 : index
    %c0_25 = arith.constant 0 : index
    %39 = vector.load %arg12[%c0_24, %c0_25] : memref<1x32xf32, #tpu.memory_space<vmem>>, vector<1x32xf32>
    %cst_26 = arith.constant dense<0.000000e+00> : vector<8xf32>
    %40 = vector.multi_reduction <add>, %37, %cst_26 [1] : vector<8x32xf32> to vector<8xf32>
    %41 = vector.shape_cast %40 : vector<8xf32> to vector<8x1xf32>
    %cst_27 = arith.constant 3.200000e+01 : f32
    %42 = vector.broadcast %cst_27 : f32 to vector<8x1xf32>
    %43 = arith.divf %41, %42 : vector<8x1xf32>
    %44 = vector.broadcast %43 : vector<8x1xf32> to vector<8x32xf32>
    %45 = arith.subf %37, %44 : vector<8x32xf32>
    %46 = arith.mulf %45, %45 : vector<8x32xf32>
    %cst_28 = arith.constant dense<0.000000e+00> : vector<8xf32>
    %47 = vector.multi_reduction <add>, %46, %cst_28 [1] : vector<8x32xf32> to vector<8xf32>
    %48 = vector.shape_cast %47 : vector<8xf32> to vector<8x1xf32>
    %cst_29 = arith.constant 3.200000e+01 : f32
    %49 = vector.broadcast %cst_29 : f32 to vector<8x1xf32>
    %50 = arith.divf %48, %49 : vector<8x1xf32>
    %51 = vector.broadcast %43 : vector<8x1xf32> to vector<8x32xf32>
    %52 = arith.subf %37, %51 : vector<8x32xf32>
    %cst_30 = arith.constant 9.99999974E-6 : f32
    %53 = vector.broadcast %cst_30 : f32 to vector<8x1xf32>
    %54 = arith.addf %50, %53 : vector<8x1xf32>
    %55 = math.rsqrt %54 : vector<8x1xf32>
    %56 = vector.broadcast %55 : vector<8x1xf32> to vector<8x32xf32>
    %57 = arith.mulf %52, %56 : vector<8x32xf32>
    %58 = vector.broadcast %38 : vector<1x32xf32> to vector<8x32xf32>
    %59 = arith.mulf %57, %58 : vector<8x32xf32>
    %60 = vector.broadcast %39 : vector<1x32xf32> to vector<8x32xf32>
    %61 = arith.addf %59, %60 : vector<8x32xf32>
    %62 = arith.truncf %61 : vector<8x32xf32> to vector<8x32xbf16>
    %c0_31 = arith.constant 0 : index
    %c0_32 = arith.constant 0 : index
    %63 = vector.load %arg13[%c0_31, %c0_32] : memref<32x64xbf16, #tpu.memory_space<vmem>>, vector<32x64xbf16>
    %cst_33 = arith.constant dense<0.000000e+00> : vector<8x64xf32>
    %64 = tpu.matmul %62, %63, %cst_33 {dimension_numbers = #tpu.dot_dimension_numbers<[1], [0], [0], [1], [0, 0, 1, 1], [], []>} : vector<8x32xbf16>, vector<32x64xbf16>, vector<8x64xf32> -> vector<8x64xf32>
    %c0_34 = arith.constant 0 : index
    %c0_35 = arith.constant 0 : index
    %65 = vector.load %arg14[%c0_34, %c0_35] : memref<1x64xf32, #tpu.memory_space<vmem>>, vector<1x64xf32>
    %66 = vector.broadcast %65 : vector<1x64xf32> to vector<8x64xf32>
    %67 = arith.addf %64, %66 : vector<8x64xf32>
    %cst_36 = arith.constant 0.000000e+00 : f32
    %68 = vector.broadcast %cst_36 : f32 to vector<8x64xf32>
    %69 = arith.maximumf %67, %68 : vector<8x64xf32>
    %70 = arith.truncf %69 : vector<8x64xf32> to vector<8x64xbf16>
    %c0_37 = arith.constant 0 : index
    %c0_38 = arith.constant 0 : index
    %71 = vector.load %arg15[%c0_37, %c0_38] : memref<64x32xbf16, #tpu.memory_space<vmem>>, vector<64x32xbf16>
    %cst_39 = arith.constant dense<0.000000e+00> : vector<8x32xf32>
    %72 = tpu.matmul %70, %71, %cst_39 {dimension_numbers = #tpu.dot_dimension_numbers<[1], [0], [0], [1], [0, 0, 1, 1], [], []>} : vector<8x64xbf16>, vector<64x32xbf16>, vector<8x32xf32> -> vector<8x32xf32>
    %c0_40 = arith.constant 0 : index
    %c0_41 = arith.constant 0 : index
    %73 = vector.load %arg16[%c0_40, %c0_41] : memref<1x32xf32, #tpu.memory_space<vmem>>, vector<1x32xf32>
    %74 = vector.broadcast %73 : vector<1x32xf32> to vector<8x32xf32>
    %75 = arith.addf %72, %74 : vector<8x32xf32>
    %76 = arith.addf %61, %75 : vector<8x32xf32>
    %c0_42 = arith.constant 0 : index
    %c0_43 = arith.constant 0 : index
    %77 = vector.load %arg17[%c0_42, %c0_43] : memref<1x32xf32, #tpu.memory_space<vmem>>, vector<1x32xf32>
    %c0_44 = arith.constant 0 : index
    %c0_45 = arith.constant 0 : index
    %78 = vector.load %arg18[%c0_44, %c0_45] : memref<1x32xf32, #tpu.memory_space<vmem>>, vector<1x32xf32>
    %cst_46 = arith.constant dense<0.000000e+00> : vector<8xf32>
    %79 = vector.multi_reduction <add>, %76, %cst_46 [1] : vector<8x32xf32> to vector<8xf32>
    %80 = vector.shape_cast %79 : vector<8xf32> to vector<8x1xf32>
    %cst_47 = arith.constant 3.200000e+01 : f32
    %81 = vector.broadcast %cst_47 : f32 to vector<8x1xf32>
    %82 = arith.divf %80, %81 : vector<8x1xf32>
    %83 = vector.broadcast %82 : vector<8x1xf32> to vector<8x32xf32>
    %84 = arith.subf %76, %83 : vector<8x32xf32>
    %85 = arith.mulf %84, %84 : vector<8x32xf32>
    %cst_48 = arith.constant dense<0.000000e+00> : vector<8xf32>
    %86 = vector.multi_reduction <add>, %85, %cst_48 [1] : vector<8x32xf32> to vector<8xf32>
    %87 = vector.shape_cast %86 : vector<8xf32> to vector<8x1xf32>
    %cst_49 = arith.constant 3.200000e+01 : f32
    %88 = vector.broadcast %cst_49 : f32 to vector<8x1xf32>
    %89 = arith.divf %87, %88 : vector<8x1xf32>
    %90 = vector.broadcast %82 : vector<8x1xf32> to vector<8x32xf32>
    %91 = arith.subf %76, %90 : vector<8x32xf32>
    %cst_50 = arith.constant 9.99999974E-6 : f32
    %92 = vector.broadcast %cst_50 : f32 to vector<8x1xf32>
    %93 = arith.addf %89, %92 : vector<8x1xf32>
    %94 = math.rsqrt %93 : vector<8x1xf32>
    %95 = vector.broadcast %94 : vector<8x1xf32> to vector<8x32xf32>
    %96 = arith.mulf %91, %95 : vector<8x32xf32>
    %97 = vector.broadcast %77 : vector<1x32xf32> to vector<8x32xf32>
    %98 = arith.mulf %96, %97 : vector<8x32xf32>
    %99 = vector.broadcast %78 : vector<1x32xf32> to vector<8x32xf32>
    %100 = arith.addf %98, %99 : vector<8x32xf32>
    %c0_51 = arith.constant 0 : index
    %c0_52 = arith.constant 0 : index
    %c0_53 = arith.constant 0 : index
    %101 = vector.load %arg19[%c0_51, %c0_52, %c0_53] : memref<1x8x32xf32, #tpu.memory_space<vmem>>, vector<1x8x32xf32>
    %102 = vector.shape_cast %101 : vector<1x8x32xf32> to vector<8x32xf32>
    %103 = vector.shape_cast %100 : vector<8x32xf32> to vector<1x8x32xf32>
    tpu.vector_store %arg19[%c0_51, %c0_52, %c0_53], %103 {strides = array<i32>} : memref<1x8x32xf32, #tpu.memory_space<vmem>>, vector<1x8x32xf32>,
    return
  }
  func.func @transform_0(%arg0: i32, %arg1: i32) -> (i32, i32, i32) {
    %c0_i32 = arith.constant 0 : i32
    %c0_i32_0 = arith.constant 0 : i32
    %c0_i32_1 = arith.constant 0 : i32
    return %arg0, %c0_i32, %c0_i32_0 : i32, i32, i32
  }
  func.func @transform_1(%arg0: i32, %arg1: i32) -> (i32, i32) {
    %c0_i32 = arith.constant 0 : i32
    %c0_i32_0 = arith.constant 0 : i32
    %c0_i32_1 = arith.constant 0 : i32
    return %c0_i32, %c0_i32_0 : i32, i32
  }
  func.func @transform_2(%arg0: i32, %arg1: i32) -> (i32, i32) {
    %c0_i32 = arith.constant 0 : i32
    %c0_i32_0 = arith.constant 0 : i32
    %c0_i32_1 = arith.constant 0 : i32
    return %c0_i32, %c0_i32_0 : i32, i32
  }
  func.func @transform_3(%arg0: i32, %arg1: i32) -> (i32, i32) {
    %c0_i32 = arith.constant 0 : i32
    %c0_i32_0 = arith.constant 0 : i32
    %c0_i32_1 = arith.constant 0 : i32
    return %c0_i32, %c0_i32_0 : i32, i32
  }
  func.func @transform_4(%arg0: i32, %arg1: i32) -> (i32, i32) {
    %c0_i32 = arith.constant 0 : i32
    %c0_i32_0 = arith.constant 0 : i32
    %c0_i32_1 = arith.constant 0 : i32
    return %c0_i32, %c0_i32_0 : i32, i32
  }
  func.func @transform_5(%arg0: i32, %arg1: i32) -> (i32, i32) {
    %c0_i32 = arith.constant 0 : i32
    %c0_i32_0 = arith.constant 0 : i32
    %c0_i32_1 = arith.constant 0 : i32
    return %c0_i32, %c0_i32_0 : i32, i32
  }
  func.func @transform_6(%arg0: i32, %arg1: i32) -> (i32, i32) {
    %c0_i32 = arith.constant 0 : i32
    %c0_i32_0 = arith.constant 0 : i32
    %c0_i32_1 = arith.constant 0 : i32
    return %c0_i32, %c0_i32_0 : i32, i32
  }
  func.func @transform_7(%arg0: i32, %arg1: i32) -> (i32, i32) {
    %c0_i32 = arith.constant 0 : i32
    %c0_i32_0 = arith.constant 0 : i32
    %c0_i32_1 = arith.constant 0 : i32
    return %c0_i32, %c0_i32_0 : i32, i32
  }
  func.func @transform_8(%arg0: i32, %arg1: i32) -> (i32, i32) {
    %c0_i32 = arith.constant 0 : i32
    %c0_i32_0 = arith.constant 0 : i32
    %c0_i32_1 = arith.constant 0 : i32
    return %c0_i32, %c0_i32_0 : i32, i32
  }
  func.func @transform_9(%arg0: i32, %arg1: i32) -> (i32, i32) {
    %c0_i32 = arith.constant 0 : i32
    %c0_i32_0 = arith.constant 0 : i32
    %c0_i32_1 = arith.constant 0 : i32
    return %c0_i32, %c0_i32_0 : i32, i32
  }
  func.func @transform_10(%arg0: i32, %arg1: i32) -> (i32, i32) {
    %c0_i32 = arith.constant 0 : i32
    %c0_i32_0 = arith.constant 0 : i32
    %c0_i32_1 = arith.constant 0 : i32
    return %c0_i32, %c0_i32_0 : i32, i32
  }
  func.func @transform_11(%arg0: i32, %arg1: i32) -> (i32, i32) {
    %c0_i32 = arith.constant 0 : i32
    %c0_i32_0 = arith.constant 0 : i32
    %c0_i32_1 = arith.constant 0 : i32
    return %c0_i32, %c0_i32_0 : i32, i32
  }
  func.func @transform_12(%arg0: i32, %arg1: i32) -> (i32, i32) {
    %c0_i32 = arith.constant 0 : i32
    %c0_i32_0 = arith.constant 0 : i32
    %c0_i32_1 = arith.constant 0 : i32
    return %c0_i32, %c0_i32_0 : i32, i32
  }
  func.func @transform_13(%arg0: i32, %arg1: i32) -> (i32, i32) {
    %c0_i32 = arith.constant 0 : i32
    %c0_i32_0 = arith.constant 0 : i32
    %c0_i32_1 = arith.constant 0 : i32
    return %c0_i32, %c0_i32_0 : i32, i32
  }
  func.func @transform_14(%arg0: i32, %arg1: i32) -> (i32, i32) {
    %c0_i32 = arith.constant 0 : i32
    %c0_i32_0 = arith.constant 0 : i32
    %c0_i32_1 = arith.constant 0 : i32
    return %c0_i32, %c0_i32_0 : i32, i32
  }
  func.func @transform_15(%arg0: i32, %arg1: i32) -> (i32, i32) {
    %c0_i32 = arith.constant 0 : i32
    %c0_i32_0 = arith.constant 0 : i32
    %c0_i32_1 = arith.constant 0 : i32
    return %c0_i32, %c0_i32_0 : i32, i32
  }
  func.func @transform_16(%arg0: i32, %arg1: i32) -> (i32, i32) {
    %c0_i32 = arith.constant 0 : i32
    %c0_i32_0 = arith.constant 0 : i32
    %c0_i32_1 = arith.constant 0 : i32
    return %c0_i32, %c0_i32_0 : i32, i32
  }
  func.func @transform_17(%arg0: i32, %arg1: i32) -> (i32, i32, i32) {
    %c0_i32 = arith.constant 0 : i32
    %c0_i32_0 = arith.constant 0 : i32
    return %arg0, %arg1, %c0_i32 : i32, i32, i32
  }
}

module attributes {stable_mosaic.version = 11 : i64} {
  func.func @kernel(%arg0: i32, %arg1: i32, %arg2: memref<1x8x32xf32, #tpu.memory_space<vmem>>, %arg3: memref<32x32xbf16, #tpu.memory_space<vmem>>, %arg4: memref<32x32xbf16, #tpu.memory_space<vmem>>, %arg5: memref<32x32xbf16, #tpu.memory_space<vmem>>, %arg6: memref<1x32xf32, #tpu.memory_space<vmem>>, %arg7: memref<1x32xf32, #tpu.memory_space<vmem>>, %arg8: memref<1x32xf32, #tpu.memory_space<vmem>>, %arg9: memref<32x32xbf16, #tpu.memory_space<vmem>>, %arg10: memref<1x32xf32, #tpu.memory_space<vmem>>, %arg11: memref<1x32xf32, #tpu.memory_space<vmem>>, %arg12: memref<1x32xf32, #tpu.memory_space<vmem>>, %arg13: memref<32x64xbf16, #tpu.memory_space<vmem>>, %arg14: memref<1x64xf32, #tpu.memory_space<vmem>>, %arg15: memref<64x32xbf16, #tpu.memory_space<vmem>>, %arg16: memref<1x32xf32, #tpu.memory_space<vmem>>, %arg17: memref<1x32xf32, #tpu.memory_space<vmem>>, %arg18: memref<1x32xf32, #tpu.memory_space<vmem>>, %arg19: memref<1x8x32xf32, #tpu.memory_space<vmem>>, %arg20: memref<4x8x8xbf16, #tpu.memory_space<vmem>>, %arg21: memref<4x8x8xbf16, #tpu.memory_space<vmem>>) attributes {dimension_semantics = [#tpu.dimension_semantics<parallel>, #tpu.dimension_semantics<arbitrary>], iteration_bounds = array<i64: 2, 1>, scalar_prefetch = 0 : i64, scratch_operands = 2 : i64, tpu.core_type = #tpu.core_type<tc>, window_params = [{transform_indices = @transform_0, window_bounds = array<i64: 1, 8, 32>}, {pipeline_mode = #tpu.pipeline_mode<synchronous>, transform_indices = @transform_1, window_bounds = array<i64: 32, 32>}, {pipeline_mode = #tpu.pipeline_mode<synchronous>, transform_indices = @transform_2, window_bounds = array<i64: 32, 32>}, {pipeline_mode = #tpu.pipeline_mode<synchronous>, transform_indices = @transform_3, window_bounds = array<i64: 32, 32>}, {pipeline_mode = #tpu.pipeline_mode<synchronous>, transform_indices = @transform_4, window_bounds = array<i64: 1, 32>}, {pipeline_mode = #tpu.pipeline_mode<synchronous>, transform_indices = @transform_5, window_bounds = array<i64: 1, 32>}, {pipeline_mode = #tpu.pipeline_mode<synchronous>, transform_indices = @transform_6, window_bounds = array<i64: 1, 32>}, {pipeline_mode = #tpu.pipeline_mode<synchronous>, transform_indices = @transform_7, window_bounds = array<i64: 32, 32>}, {pipeline_mode = #tpu.pipeline_mode<synchronous>, transform_indices = @transform_8, window_bounds = array<i64: 1, 32>}, {pipeline_mode = #tpu.pipeline_mode<synchronous>, transform_indices = @transform_9, window_bounds = array<i64: 1, 32>}, {pipeline_mode = #tpu.pipeline_mode<synchronous>, transform_indices = @transform_10, window_bounds = array<i64: 1, 32>}, {pipeline_mode = #tpu.pipeline_mode<synchronous>, transform_indices = @transform_11, window_bounds = array<i64: 32, 64>}, {pipeline_mode = #tpu.pipeline_mode<synchronous>, transform_indices = @transform_12, window_bounds = array<i64: 1, 64>}, {pipeline_mode = #tpu.pipeline_mode<synchronous>, transform_indices = @transform_13, window_bounds = array<i64: 64, 32>}, {pipeline_mode = #tpu.pipeline_mode<synchronous>, transform_indices = @transform_14, window_bounds = array<i64: 1, 32>}, {pipeline_mode = #tpu.pipeline_mode<synchronous>, transform_indices = @transform_15, window_bounds = array<i64: 1, 32>}, {pipeline_mode = #tpu.pipeline_mode<synchronous>, transform_indices = @transform_16, window_bounds = array<i64: 1, 32>}, {transform_indices = @transform_17, window_bounds = array<i64: 1, 8, 32>}]} {
    %c0_i32 = arith.constant 0 : i32
    %0 = arith.cmpi eq, %arg1, %c0_i32 : i32
    %1 = arith.extui %0 : i1 to i32
    %c0_i32_0 = arith.constant 0 : i32
    %2 = arith.cmpi ne, %1, %c0_i32_0 : i32
    scf.if %2 {
      %c0_54 = arith.constant 0 : index
      %c0_55 = arith.constant 0 : index
      %c0_56 = arith.constant 0 : index
      %104 = vector.load %arg2[%c0_54, %c0_55, %c0_56] : memref<1x8x32xf32, #tpu.memory_space<vmem>>, vector<1x8x32xf32>
      %105 = vector.shape_cast %104 : vector<1x8x32xf32> to vector<8x32xf32>
      %106 = arith.truncf %105 : vector<8x32xf32> to vector<8x32xbf16>
      %c0_57 = arith.constant 0 : index
      %c0_58 = arith.constant 0 : index
      %107 = vector.load %arg4[%c0_57, %c0_58] : memref<32x32xbf16, #tpu.memory_space<vmem>>, vector<32x32xbf16>
      %cst_59 = arith.constant dense<0.000000e+00> : vector<8x32xf32>
      %108 = tpu.matmul %106, %107, %cst_59 {dimension_numbers = #tpu.dot_dimension_numbers<[1], [0], [0], [1], [0, 0, 1, 1], [], []>} : vector<8x32xbf16>, vector<32x32xbf16>, vector<8x32xf32> -> vector<8x32xf32>
      %c0_60 = arith.constant 0 : index
      %c0_61 = arith.constant 0 : index
      %109 = vector.load %arg7[%c0_60, %c0_61] : memref<1x32xf32, #tpu.memory_space<vmem>>, vector<1x32xf32>
      %110 = vector.broadcast %109 : vector<1x32xf32> to vector<8x32xf32>
      %111 = arith.addf %108, %110 : vector<8x32xf32>
      %c0_62 = arith.constant 0 : index
      %c0_63 = arith.constant 0 : index
      %112 = vector.load %arg5[%c0_62, %c0_63] : memref<32x32xbf16, #tpu.memory_space<vmem>>, vector<32x32xbf16>
      %cst_64 = arith.constant dense<0.000000e+00> : vector<8x32xf32>
      %113 = tpu.matmul %106, %112, %cst_64 {dimension_numbers = #tpu.dot_dimension_numbers<[1], [0], [0], [1], [0, 0, 1, 1], [], []>} : vector<8x32xbf16>, vector<32x32xbf16>, vector<8x32xf32> -> vector<8x32xf32>
      %c0_65 = arith.constant 0 : index
      %c0_66 = arith.constant 0 : index
      %114 = vector.load %arg8[%c0_65, %c0_66] : memref<1x32xf32, #tpu.memory_space<vmem>>, vector<1x32xf32>
      %115 = vector.broadcast %114 : vector<1x32xf32> to vector<8x32xf32>
      %116 = arith.addf %113, %115 : vector<8x32xf32>
      %117 = vector.shape_cast %111 : vector<8x32xf32> to vector<8x4x8xf32>
      %118 = tpu.transpose %117, [1, 0, 2] : vector<8x4x8xf32> -> vector<4x8x8xf32>
      %119 = arith.truncf %118 : vector<4x8x8xf32> to vector<4x8x8xbf16>
      %c0_67 = arith.constant 0 : index
      %c0_68 = arith.constant 0 : index
      %c0_69 = arith.constant 0 : index
      %120 = vector.load %arg20[%c0_67, %c0_68, %c0_69] : memref<4x8x8xbf16, #tpu.memory_space<vmem>>, vector<4x8x8xbf16>
      tpu.vector_store %arg20[%c0_67, %c0_68, %c0_69], %119 {strides = array<i32>} : memref<4x8x8xbf16, #tpu.memory_space<vmem>>, vector<4x8x8xbf16>,
      %121 = vector.shape_cast %116 : vector<8x32xf32> to vector<8x4x8xf32>
      %122 = tpu.transpose %121, [1, 0, 2] : vector<8x4x8xf32> -> vector<4x8x8xf32>
      %123 = arith.truncf %122 : vector<4x8x8xf32> to vector<4x8x8xbf16>
      %c0_70 = arith.constant 0 : index
      %c0_71 = arith.constant 0 : index
      %c0_72 = arith.constant 0 : index
      %124 = vector.load %arg21[%c0_70, %c0_71, %c0_72] : memref<4x8x8xbf16, #tpu.memory_space<vmem>>, vector<4x8x8xbf16>
      tpu.vector_store %arg21[%c0_70, %c0_71, %c0_72], %123 {strides = array<i32>} : memref<4x8x8xbf16, #tpu.memory_space<vmem>>, vector<4x8x8xbf16>,
    } else {
    }
    %c0 = arith.constant 0 : index
    %c0_1 = arith.constant 0 : index
    %c0_2 = arith.constant 0 : index
    %3 = vector.load %arg2[%c0, %c0_1, %c0_2] : memref<1x8x32xf32, #tpu.memory_space<vmem>>, vector<1x8x32xf32>
    %4 = vector.shape_cast %3 : vector<1x8x32xf32> to vector<8x32xf32>
    %5 = arith.truncf %4 : vector<8x32xf32> to vector<8x32xbf16>
    %c0_3 = arith.constant 0 : index
    %c0_4 = arith.constant 0 : index
    %6 = vector.load %arg3[%c0_3, %c0_4] : memref<32x32xbf16, #tpu.memory_space<vmem>>, vector<32x32xbf16>
    %cst = arith.constant dense<0.000000e+00> : vector<8x32xf32>
    %7 = tpu.matmul %5, %6, %cst {dimension_numbers = #tpu.dot_dimension_numbers<[1], [0], [0], [1], [0, 0, 1, 1], [], []>} : vector<8x32xbf16>, vector<32x32xbf16>, vector<8x32xf32> -> vector<8x32xf32>
    %c0_5 = arith.constant 0 : index
    %c0_6 = arith.constant 0 : index
    %8 = vector.load %arg6[%c0_5, %c0_6] : memref<1x32xf32, #tpu.memory_space<vmem>>, vector<1x32xf32>
    %9 = vector.broadcast %8 : vector<1x32xf32> to vector<8x32xf32>
    %10 = arith.addf %7, %9 : vector<8x32xf32>
    %11 = vector.shape_cast %10 : vector<8x32xf32> to vector<8x4x8xf32>
    %12 = tpu.transpose %11, [1, 0, 2] : vector<8x4x8xf32> -> vector<4x8x8xf32>
    %13 = arith.truncf %12 : vector<4x8x8xf32> to vector<4x8x8xbf16>
    %c0_7 = arith.constant 0 : index
    %c0_8 = arith.constant 0 : index
    %c0_9 = arith.constant 0 : index
    %14 = vector.load %arg20[%c0_7, %c0_8, %c0_9] : memref<4x8x8xbf16, #tpu.memory_space<vmem>>, vector<4x8x8xbf16>
    "tpu.trace_start"() <{level = 10 : i32, message = "hqd,hkd->hqk"}> : () -> ()
    %cst_10 = arith.constant dense<0.000000e+00> : vector<4x8x8xf32>
    %15 = tpu.matmul %13, %14, %cst_10 {dimension_numbers = #tpu.dot_dimension_numbers<[2], [2], [1], [1], [0, 0, 0, 1, 1, 1], [0], [0]>} : vector<4x8x8xbf16>, vector<4x8x8xbf16>, vector<4x8x8xf32> -> vector<4x8x8xf32>
    "tpu.trace_stop"() : () -> ()
    %cst_11 = arith.constant dense<0xFF800000> : vector<4x8xf32>
    %16 = vector.multi_reduction <maximumf>, %15, %cst_11 [2] : vector<4x8x8xf32> to vector<4x8xf32>
    %17 = vector.shape_cast %16 : vector<4x8xf32> to vector<4x8x1xf32>
    %18 = vector.broadcast %17 : vector<4x8x1xf32> to vector<4x8x8xf32>
    %19 = arith.subf %15, %18 : vector<4x8x8xf32>
    %20 = math.exp %19 : vector<4x8x8xf32>
    %cst_12 = arith.constant dense<0.000000e+00> : vector<4x8xf32>
    %21 = vector.multi_reduction <add>, %20, %cst_12 [2] : vector<4x8x8xf32> to vector<4x8xf32>
    %22 = vector.shape_cast %21 : vector<4x8xf32> to vector<4x8x1xf32>
    %c0_13 = arith.constant 0 : index
    %c0_14 = arith.constant 0 : index
    %c0_15 = arith.constant 0 : index
    %23 = vector.load %arg21[%c0_13, %c0_14, %c0_15] : memref<4x8x8xbf16, #tpu.memory_space<vmem>>, vector<4x8x8xbf16>
    %24 = arith.truncf %20 : vector<4x8x8xf32> to vector<4x8x8xbf16>
    "tpu.trace_start"() <{level = 10 : i32, message = "hqk,hkd->hqd"}> : () -> ()
    %cst_16 = arith.constant dense<0.000000e+00> : vector<4x8x8xf32>
    %25 = tpu.matmul %24, %23, %cst_16 {dimension_numbers = #tpu.dot_dimension_numbers<[2], [1], [1], [2], [0, 0, 0, 1, 1, 2], [0], [0]>} : vector<4x8x8xbf16>, vector<4x8x8xbf16>, vector<4x8x8xf32> -> vector<4x8x8xf32>
    "tpu.trace_stop"() : () -> ()
    %26 = tpu.reciprocal %22 : vector<4x8x1xf32> -> vector<4x8x1xf32>
    %27 = vector.broadcast %26 : vector<4x8x1xf32> to vector<4x8x8xf32>
    %28 = arith.mulf %25, %27 : vector<4x8x8xf32>
    %29 = tpu.transpose %28, [1, 0, 2] : vector<4x8x8xf32> -> vector<8x4x8xf32>
    %30 = vector.shape_cast %29 : vector<8x4x8xf32> to vector<8x32xf32>
    %31 = arith.truncf %30 : vector<8x32xf32> to vector<8x32xbf16>
    %c0_17 = arith.constant 0 : index
    %c0_18 = arith.constant 0 : index
    %32 = vector.load %arg9[%c0_17, %c0_18] : memref<32x32xbf16, #tpu.memory_space<vmem>>, vector<32x32xbf16>
    %cst_19 = arith.constant dense<0.000000e+00> : vector<8x32xf32>
    %33 = tpu.matmul %31, %32, %cst_19 {dimension_numbers = #tpu.dot_dimension_numbers<[1], [0], [0], [1], [0, 0, 1, 1], [], []>} : vector<8x32xbf16>, vector<32x32xbf16>, vector<8x32xf32> -> vector<8x32xf32>
    %c0_20 = arith.constant 0 : index
    %c0_21 = arith.constant 0 : index
    %34 = vector.load %arg10[%c0_20, %c0_21] : memref<1x32xf32, #tpu.memory_space<vmem>>, vector<1x32xf32>
    %35 = vector.broadcast %34 : vector<1x32xf32> to vector<8x32xf32>
    %36 = arith.addf %33, %35 : vector<8x32xf32>
    %37 = arith.addf %4, %36 : vector<8x32xf32>
    %c0_22 = arith.constant 0 : index
    %c0_23 = arith.constant 0 : index
    %38 = vector.load %arg11[%c0_22, %c0_23] : memref<1x32xf32, #tpu.memory_space<vmem>>, vector<1x32xf32>
    %c0_24 = arith.constant 0 : index
    %c0_25 = arith.constant 0 : index
    %39 = vector.load %arg12[%c0_24, %c0_25] : memref<1x32xf32, #tpu.memory_space<vmem>>, vector<1x32xf32>
    %cst_26 = arith.constant dense<0.000000e+00> : vector<8xf32>
    %40 = vector.multi_reduction <add>, %37, %cst_26 [1] : vector<8x32xf32> to vector<8xf32>
    %41 = vector.shape_cast %40 : vector<8xf32> to vector<8x1xf32>
    %cst_27 = arith.constant 3.200000e+01 : f32
    %42 = vector.broadcast %cst_27 : f32 to vector<8x1xf32>
    %43 = arith.divf %41, %42 : vector<8x1xf32>
    %44 = vector.broadcast %43 : vector<8x1xf32> to vector<8x32xf32>
    %45 = arith.subf %37, %44 : vector<8x32xf32>
    %46 = arith.mulf %45, %45 : vector<8x32xf32>
    %cst_28 = arith.constant dense<0.000000e+00> : vector<8xf32>
    %47 = vector.multi_reduction <add>, %46, %cst_28 [1] : vector<8x32xf32> to vector<8xf32>
    %48 = vector.shape_cast %47 : vector<8xf32> to vector<8x1xf32>
    %cst_29 = arith.constant 3.200000e+01 : f32
    %49 = vector.broadcast %cst_29 : f32 to vector<8x1xf32>
    %50 = arith.divf %48, %49 : vector<8x1xf32>
    %51 = vector.broadcast %43 : vector<8x1xf32> to vector<8x32xf32>
    %52 = arith.subf %37, %51 : vector<8x32xf32>
    %cst_30 = arith.constant 9.99999974E-6 : f32
    %53 = vector.broadcast %cst_30 : f32 to vector<8x1xf32>
    %54 = arith.addf %50, %53 : vector<8x1xf32>
    %55 = math.rsqrt %54 : vector<8x1xf32>
    %56 = vector.broadcast %55 : vector<8x1xf32> to vector<8x32xf32>
    %57 = arith.mulf %52, %56 : vector<8x32xf32>
    %58 = vector.broadcast %38 : vector<1x32xf32> to vector<8x32xf32>
    %59 = arith.mulf %57, %58 : vector<8x32xf32>
    %60 = vector.broadcast %39 : vector<1x32xf32> to vector<8x32xf32>
    %61 = arith.addf %59, %60 : vector<8x32xf32>
    %62 = arith.truncf %61 : vector<8x32xf32> to vector<8x32xbf16>
    %c0_31 = arith.constant 0 : index
    %c0_32 = arith.constant 0 : index
    %63 = vector.load %arg13[%c0_31, %c0_32] : memref<32x64xbf16, #tpu.memory_space<vmem>>, vector<32x64xbf16>
    %cst_33 = arith.constant dense<0.000000e+00> : vector<8x64xf32>
    %64 = tpu.matmul %62, %63, %cst_33 {dimension_numbers = #tpu.dot_dimension_numbers<[1], [0], [0], [1], [0, 0, 1, 1], [], []>} : vector<8x32xbf16>, vector<32x64xbf16>, vector<8x64xf32> -> vector<8x64xf32>
    %c0_34 = arith.constant 0 : index
    %c0_35 = arith.constant 0 : index
    %65 = vector.load %arg14[%c0_34, %c0_35] : memref<1x64xf32, #tpu.memory_space<vmem>>, vector<1x64xf32>
    %66 = vector.broadcast %65 : vector<1x64xf32> to vector<8x64xf32>
    %67 = arith.addf %64, %66 : vector<8x64xf32>
    %cst_36 = arith.constant 0.000000e+00 : f32
    %68 = vector.broadcast %cst_36 : f32 to vector<8x64xf32>
    %69 = arith.maximumf %67, %68 : vector<8x64xf32>
    %70 = arith.truncf %69 : vector<8x64xf32> to vector<8x64xbf16>
    %c0_37 = arith.constant 0 : index
    %c0_38 = arith.constant 0 : index
    %71 = vector.load %arg15[%c0_37, %c0_38] : memref<64x32xbf16, #tpu.memory_space<vmem>>, vector<64x32xbf16>
    %cst_39 = arith.constant dense<0.000000e+00> : vector<8x32xf32>
    %72 = tpu.matmul %70, %71, %cst_39 {dimension_numbers = #tpu.dot_dimension_numbers<[1], [0], [0], [1], [0, 0, 1, 1], [], []>} : vector<8x64xbf16>, vector<64x32xbf16>, vector<8x32xf32> -> vector<8x32xf32>
    %c0_40 = arith.constant 0 : index
    %c0_41 = arith.constant 0 : index
    %73 = vector.load %arg16[%c0_40, %c0_41] : memref<1x32xf32, #tpu.memory_space<vmem>>, vector<1x32xf32>
    %74 = vector.broadcast %73 : vector<1x32xf32> to vector<8x32xf32>
    %75 = arith.addf %72, %74 : vector<8x32xf32>
    %76 = arith.addf %61, %75 : vector<8x32xf32>
    %c0_42 = arith.constant 0 : index
    %c0_43 = arith.constant 0 : index
    %77 = vector.load %arg17[%c0_42, %c0_43] : memref<1x32xf32, #tpu.memory_space<vmem>>, vector<1x32xf32>
    %c0_44 = arith.constant 0 : index
    %c0_45 = arith.constant 0 : index
    %78 = vector.load %arg18[%c0_44, %c0_45] : memref<1x32xf32, #tpu.memory_space<vmem>>, vector<1x32xf32>
    %cst_46 = arith.constant dense<0.000000e+00> : vector<8xf32>
    %79 = vector.multi_reduction <add>, %76, %cst_46 [1] : vector<8x32xf32> to vector<8xf32>
    %80 = vector.shape_cast %79 : vector<8xf32> to vector<8x1xf32>
    %cst_47 = arith.constant 3.200000e+01 : f32
    %81 = vector.broadcast %cst_47 : f32 to vector<8x1xf32>
    %82 = arith.divf %80, %81 : vector<8x1xf32>
    %83 = vector.broadcast %82 : vector<8x1xf32> to vector<8x32xf32>
    %84 = arith.subf %76, %83 : vector<8x32xf32>
    %85 = arith.mulf %84, %84 : vector<8x32xf32>
    %cst_48 = arith.constant dense<0.000000e+00> : vector<8xf32>
    %86 = vector.multi_reduction <add>, %85, %cst_48 [1] : vector<8x32xf32> to vector<8xf32>
    %87 = vector.shape_cast %86 : vector<8xf32> to vector<8x1xf32>
    %cst_49 = arith.constant 3.200000e+01 : f32
    %88 = vector.broadcast %cst_49 : f32 to vector<8x1xf32>
    %89 = arith.divf %87, %88 : vector<8x1xf32>
    %90 = vector.broadcast %82 : vector<8x1xf32> to vector<8x32xf32>
    %91 = arith.subf %76, %90 : vector<8x32xf32>
    %cst_50 = arith.constant 9.99999974E-6 : f32
    %92 = vector.broadcast %cst_50 : f32 to vector<8x1xf32>
    %93 = arith.addf %89, %92 : vector<8x1xf32>
    %94 = math.rsqrt %93 : vector<8x1xf32>
    %95 = vector.broadcast %94 : vector<8x1xf32> to vector<8x32xf32>
    %96 = arith.mulf %91, %95 : vector<8x32xf32>
    %97 = vector.broadcast %77 : vector<1x32xf32> to vector<8x32xf32>
    %98 = arith.mulf %96, %97 : vector<8x32xf32>
    %99 = vector.broadcast %78 : vector<1x32xf32> to vector<8x32xf32>
    %100 = arith.addf %98, %99 : vector<8x32xf32>
    %c0_51 = arith.constant 0 : index
    %c0_52 = arith.constant 0 : index
    %c0_53 = arith.constant 0 : index
    %101 = vector.load %arg19[%c0_51, %c0_52, %c0_53] : memref<1x8x32xf32, #tpu.memory_space<vmem>>, vector<1x8x32xf32>
    %102 = vector.shape_cast %101 : vector<1x8x32xf32> to vector<8x32xf32>
    %103 = vector.shape_cast %100 : vector<8x32xf32> to vector<1x8x32xf32>
    tpu.vector_store %arg19[%c0_51, %c0_52, %c0_53], %103 {strides = array<i32>} : memref<1x8x32xf32, #tpu.memory_space<vmem>>, vector<1x8x32xf32>,
    return
  }
  func.func @transform_0(%arg0: i32, %arg1: i32) -> (i32, i32, i32) {
    %c0_i32 = arith.constant 0 : i32
    %c0_i32_0 = arith.constant 0 : i32
    %c0_i32_1 = arith.constant 0 : i32
    return %arg0, %c0_i32, %c0_i32_0 : i32, i32, i32
  }
  func.func @transform_1(%arg0: i32, %arg1: i32) -> (i32, i32) {
    %c0_i32 = arith.constant 0 : i32
    %c0_i32_0 = arith.constant 0 : i32
    %c0_i32_1 = arith.constant 0 : i32
    return %c0_i32, %c0_i32_0 : i32, i32
  }
  func.func @transform_2(%arg0: i32, %arg1: i32) -> (i32, i32) {
    %c0_i32 = arith.constant 0 : i32
    %c0_i32_0 = arith.constant 0 : i32
    %c0_i32_1 = arith.constant 0 : i32
    return %c0_i32, %c0_i32_0 : i32, i32
  }
  func.func @transform_3(%arg0: i32, %arg1: i32) -> (i32, i32) {
    %c0_i32 = arith.constant 0 : i32
    %c0_i32_0 = arith.constant 0 : i32
    %c0_i32_1 = arith.constant 0 : i32
    return %c0_i32, %c0_i32_0 : i32, i32
  }
  func.func @transform_4(%arg0: i32, %arg1: i32) -> (i32, i32) {
    %c0_i32 = arith.constant 0 : i32
    %c0_i32_0 = arith.constant 0 : i32
    %c0_i32_1 = arith.constant 0 : i32
    return %c0_i32, %c0_i32_0 : i32, i32
  }
  func.func @transform_5(%arg0: i32, %arg1: i32) -> (i32, i32) {
    %c0_i32 = arith.constant 0 : i32
    %c0_i32_0 = arith.constant 0 : i32
    %c0_i32_1 = arith.constant 0 : i32
    return %c0_i32, %c0_i32_0 : i32, i32
  }
  func.func @transform_6(%arg0: i32, %arg1: i32) -> (i32, i32) {
    %c0_i32 = arith.constant 0 : i32
    %c0_i32_0 = arith.constant 0 : i32
    %c0_i32_1 = arith.constant 0 : i32
    return %c0_i32, %c0_i32_0 : i32, i32
  }
  func.func @transform_7(%arg0: i32, %arg1: i32) -> (i32, i32) {
    %c0_i32 = arith.constant 0 : i32
    %c0_i32_0 = arith.constant 0 : i32
    %c0_i32_1 = arith.constant 0 : i32
    return %c0_i32, %c0_i32_0 : i32, i32
  }
  func.func @transform_8(%arg0: i32, %arg1: i32) -> (i32, i32) {
    %c0_i32 = arith.constant 0 : i32
    %c0_i32_0 = arith.constant 0 : i32
    %c0_i32_1 = arith.constant 0 : i32
    return %c0_i32, %c0_i32_0 : i32, i32
  }
  func.func @transform_9(%arg0: i32, %arg1: i32) -> (i32, i32) {
    %c0_i32 = arith.constant 0 : i32
    %c0_i32_0 = arith.constant 0 : i32
    %c0_i32_1 = arith.constant 0 : i32
    return %c0_i32, %c0_i32_0 : i32, i32
  }
  func.func @transform_10(%arg0: i32, %arg1: i32) -> (i32, i32) {
    %c0_i32 = arith.constant 0 : i32
    %c0_i32_0 = arith.constant 0 : i32
    %c0_i32_1 = arith.constant 0 : i32
    return %c0_i32, %c0_i32_0 : i32, i32
  }
  func.func @transform_11(%arg0: i32, %arg1: i32) -> (i32, i32) {
    %c0_i32 = arith.constant 0 : i32
    %c0_i32_0 = arith.constant 0 : i32
    %c0_i32_1 = arith.constant 0 : i32
    return %c0_i32, %c0_i32_0 : i32, i32
  }
  func.func @transform_12(%arg0: i32, %arg1: i32) -> (i32, i32) {
    %c0_i32 = arith.constant 0 : i32
    %c0_i32_0 = arith.constant 0 : i32
    %c0_i32_1 = arith.constant 0 : i32
    return %c0_i32, %c0_i32_0 : i32, i32
  }
  func.func @transform_13(%arg0: i32, %arg1: i32) -> (i32, i32) {
    %c0_i32 = arith.constant 0 : i32
    %c0_i32_0 = arith.constant 0 : i32
    %c0_i32_1 = arith.constant 0 : i32
    return %c0_i32, %c0_i32_0 : i32, i32
  }
  func.func @transform_14(%arg0: i32, %arg1: i32) -> (i32, i32) {
    %c0_i32 = arith.constant 0 : i32
    %c0_i32_0 = arith.constant 0 : i32
    %c0_i32_1 = arith.constant 0 : i32
    return %c0_i32, %c0_i32_0 : i32, i32
  }
  func.func @transform_15(%arg0: i32, %arg1: i32) -> (i32, i32) {
    %c0_i32 = arith.constant 0 : i32
    %c0_i32_0 = arith.constant 0 : i32
    %c0_i32_1 = arith.constant 0 : i32
    return %c0_i32, %c0_i32_0 : i32, i32
  }
  func.func @transform_16(%arg0: i32, %arg1: i32) -> (i32, i32) {
    %c0_i32 = arith.constant 0 : i32
    %c0_i32_0 = arith.constant 0 : i32
    %c0_i32_1 = arith.constant 0 : i32
    return %c0_i32, %c0_i32_0 : i32, i32
  }
  func.func @transform_17(%arg0: i32, %arg1: i32) -> (i32, i32, i32) {
    %c0_i32 = arith.constant 0 : i32
    %c0_i32_0 = arith.constant 0 : i32
    return %arg0, %arg1, %c0_i32 : i32, i32, i32
  }
}

</mosaic_0001>

<bundles_post_ra>
// kernel: tpu_custom_call.1
= control target key start
LH: loop header
LB: loop body
LE: loop exit
PB: predicated region body
PF: predicated region fallthrough
CT: control target
= control target key end

     0   :  { %s3227_s0 = inlined_call_operand.vmem [shape: f32[2,8,32], index: 0, kind: input, shape index: {}]   ;;  %s3228_s1 = inlined_call_operand.vmem [shape: bf16[32,32], index: 1, kind: input, shape index: {}]   ;;  %s3229_s2 = inlined_call_operand.vmem [shape: bf16[32,32], index: 2, kind: input, shape index: {}]   ;;  %s3230_s3 = inlined_call_operand.hbm [shape: bf16[32,32], index: 3, kind: input, shape index: {}]   ;;  %s3231_s4 = inlined_call_operand.vmem [shape: f32[1,32], index: 4, kind: input, shape index: {}]   ;;  %s3232_s5 = inlined_call_operand.vmem [shape: f32[1,32], index: 5, kind: input, shape index: {}]   ;;  %s3233_s6 = inlined_call_operand.vmem [shape: f32[1,32], index: 6, kind: input, shape index: {}]   ;;  %s3234_s7 = inlined_call_operand.hbm [shape: bf16[32,32], index: 7, kind: input, shape index: {}]   ;;  %s3235_s8 = inlined_call_operand.vmem [shape: f32[1,32], index: 8, kind: input, shape index: {}]   ;;  %s3236_s9 = inlined_call_operand.vmem [shape: f32[1,32], index: 9, kind: input, shape index: {}]   ;;  %s3237_s10 = inlined_call_operand.vmem [shape: f32[1,32], index: 10, kind: input, shape index: {}]   ;;  %s3238_s11 = inlined_call_operand.hbm [shape: bf16[32,64], index: 11, kind: input, shape index: {}]   ;;  %s3239_s12 = inlined_call_operand.vmem [shape: f32[1,64], index: 12, kind: input, shape index: {}]   ;;  %s3240_s13 = inlined_call_operand.vmem [shape: bf16[64,32], index: 13, kind: input, shape index: {}]   ;;  %s3241_s14 = inlined_call_operand.vmem [shape: f32[1,32], index: 14, kind: input, shape index: {}]   ;;  %s3242_s15 = inlined_call_operand.vmem [shape: f32[1,32], index: 15, kind: input, shape index: {}]   ;;  %s3243_s16 = inlined_call_operand.vmem [shape: f32[1,32], index: 16, kind: input, shape index: {}]   ;;  %s3244_s17 = inlined_call_operand.hbm [shape: f32[2,8,32], index: 17, kind: output, shape index: {}]  }
   0x1   :  { %3253 = sst [smem:[#allocation21_spill]] %s3227_s0 }
   0x2   :  { %3254 = sst [smem:[#allocation22_spill]] %s3228_s1 }
   0x3   :  { %3255 = sst [smem:[#allocation23_spill]] %s3229_s2 }
   0x4   :  { %3256 = sst [smem:[#allocation24_spill]] %s3230_s3 }
   0x5   :  { %22 = vsyncpa [#allocation5], 0 }
   0x6   :  { %23 = vsyncpa [#allocation8], 0 }
   0x7   :  { %24 = vsyncpa [#allocation6], 0 }
   0x8   :  { %26 = vsyncpa [#allocation6 + $0x1], 0  ;;  %s2842_s24 = smov 0   ;;  %s2844_s25 = smov 0  }
   0x9   :  { %s2846_s26 = smov 0   ;;  %s2848_s27 = smov 0  }
   0xa   :  { %s2850_s28 = smov 0   ;;  %s2852_s29 = smov 0  }
   0xb LB: > { %3257 = sst [smem:[#allocation14_spill]] %s2714_s24  ;;  %s2241_s0 = sadd.s32 4294967295, %s2734_s29   ;;  %s2734_s29 = sphi %s2852_s29, %s32_s29   ;;  %s2730_s28 = sphi %s2850_s28, %s3281_s28   ;;  %s2726_s27 = sphi %s2848_s27, %s3280_s27   ;;  %s2722_s26 = sphi %s2846_s26, %s3279_s26   ;;  %s2718_s25 = sphi %s2844_s25, %s3283_s25   ;;  %s2714_s24 = sphi %s2842_s24, %s3282_s24  }
   0xc   : > { %3258 = sst [smem:[#allocation15_spill]] %s2722_s26  ;;  %s2242_s30 = sadd.s32 4294967294, %s2734_s29  }
   0xd   : > { %3259 = sst [smem:[#allocation16_spill]] %s2730_s28  ;;  %s44_s18 = sadd.s32 1, %s2730_s28 }
   0xe   : > { %3260 = sst [smem:[#allocation17_spill]] %s2734_s29  ;;  %s415_s19 = sadd.s32 1, %s2722_s26 }
   0xf   : > { %p46_p0 = scmp.ge.s32.totalorder %s44_s18, 2  ;;  %p425_p1 = scmp.ne.s32.totalorder %s2722_s26, %s2718_s25 }
  0x10   : > { %p426_p2 = scmp.eq.s32.totalorder %s2241_s0, 1  ;;  %p431_p3 = scmp.ne.s32.totalorder %s2718_s25, %s2714_s24 }
  0x11   : > { %s3285_s18 = smov (%p46_p0, %s44_s18), 0  ;;  %p432_p5 = scmp.eq.s32.totalorder %s2242_s30, 1 }
  0x12   : > { %3261 = sst [smem:[#allocation18_spill]] %s3285_s18  ;;  %p2882_p4 = por %p426_p2, %p425_p1 }
  0x13   : > { %s410_s20 = ssub.s32 %s2730_s28, %s3285_s18  ;;  %p2243_p6 = scmp.ge.s32.totalorder %s2734_s29, 1 }
  0x14   : > { %p413_p7 = scmp.eq.s32.totalorder %s410_s20, 0  ;;  %p2889_p8 = por %p432_p5, %p431_p3 }
  0x15   : > { %p439_p9 = scmp.lt.s32.totalorder %s2734_s29, 3  ;;  %p2901_p11 = scmp.eq.s32.totalorder %s2241_s0, 0 }
  0x16   : > { %s3263_s21 = scalar_select %p2889_p8, 1, 0 }
  0x17   : > { %s2895_s22 = scalar_select %p413_p7, %s2722_s26, %s415_s19  }
  0x18   : > { %3264 = sst [smem:[#allocation19_spill]] %s3263_s21  ;;  %p2897_p10 = pnand %p2243_p6, %p439_p9 }
  0x19   : > { %3265 = sst [smem:[#allocation20_spill]] %s2895_s22  ;;  %s2736_s30 = smov [#allocation7]  }
  0x1a   : > { %p2454_p12 = pneg %p2897_p10  ;;  %s479_s20 = sshll.u32 %s2736_s30, 4  ;;  %s480_s20 = int_to_ptr.vmem [resolvable:$true] %s479_s20 }
  0x1b   : > { %s2737_s19 = smov [#allocation4]   ;;  %s2583_s0 = scalar_lea.vmem %s480_s20, 256 }
  0x1c   : > { %p2909_p13 = pnand %p2901_p11, %p2454_p12  ;;  %s457_s28 = sshll.u32 %s2737_s19, 4  ;;  %s458_s28 = int_to_ptr.vmem [resolvable:$true] %s457_s28 }
  0x1d   : > { %p2584_p1 = scmp.ne.s32.totalorder %s480_s20, %s2583_s0  ;;  %p2591_p5 = scmp.lt.s32.totalorder %s480_s20, %s480_s20 }
  0x1e   : > { %p2574_p0 = pneg %p2909_p13  ;;  %p2592_p6 = scmp.lt.s32.totalorder %s2583_s0, %s2583_s0 }
  0x20   : > { %p2586_p2 = pnand %p2584_p1, %p2574_p0  ;;  %p2593_p7 = por %p2592_p6, %p2591_p5 }
  0x22   : > { %p2587_p3 = pneg %p2586_p2 }
  0x24   : > { %p2594_p9 = pnand %p2593_p7, %p2587_p3 }
  0x26   : > { %2597 = shalt.err (!%p2594_p9)
}
  0x27   : > { %s2738_s30 = smov 64   ;;  %s2739_s22 = smov 4  }
  0x28   : > { %2460 = dma.hbm_to_vmem [thread:$0]  (!%p2909_p13), %s3234_s7, 256, %s480_s20, [#allocation8], %s2738_s30, %s2738_s30, %s2739_s22  }
  0x29   : > { %s2609_s21 = scalar_lea.vmem %s458_s28, 256  ;;  %p2617_p8 = scmp.lt.s32.totalorder %s458_s28, %s458_s28 }
  0x2a   : > { %p2610_p12 = scmp.ne.s32.totalorder %s458_s28, %s2609_s21  ;;  %p2618_p5 = scmp.lt.s32.totalorder %s2609_s21, %s2609_s21 }
  0x2c   : > { %p2612_p1 = pnand %p2610_p12, %p2574_p0  ;;  %p2619_p3 = por %p2618_p5, %p2617_p8 }
  0x2e   : > { %p2613_p2 = pneg %p2612_p1 }
  0x30   : > { %p2620_p6 = pnand %p2619_p3, %p2613_p2 }
  0x32   : > { %2623 = shalt.err (!%p2620_p6)
}
  0x33   : > { %s3269_s3 = sld [smem:[#allocation24_spill]]  ;;  %s2740_s26 = smov [#allocation9]  }
  0x34   : > { %s501_s20 = sshll.u32 %s2740_s26, 4  ;;  %s502_s20 = int_to_ptr.vmem [resolvable:$true] %s501_s20 }
  0x35   : > { %s2635_s19 = scalar_lea.vmem %s502_s20, 256  ;;  %p2643_p1 = scmp.lt.s32.totalorder %s502_s20, %s502_s20 }
  0x36   : > { %p2636_p7 = scmp.ne.s32.totalorder %s502_s20, %s2635_s19  ;;  %p2644_p8 = scmp.lt.s32.totalorder %s2635_s19, %s2635_s19 }
  0x38   : > { %p2638_p9 = pnand %p2636_p7, %p2574_p0  ;;  %p2645_p2 = por %p2644_p8, %p2643_p1 }
  0x39   : > { %2457 = dma.hbm_to_vmem [thread:$0]  (!%p2909_p13), %s3269_s3, 256, %s458_s28, [#allocation5], %s2738_s30, %s2738_s30, %s2739_s22  }
  0x3a   : > { %p2639_p12 = pneg %p2638_p9 }
  0x3c   : > { %p2646_p5 = pnand %p2645_p2, %p2639_p12 }
  0x3e   : > { %2649 = shalt.err (!%p2646_p5)
}
  0x3f   : > { %2463 = dma.hbm_to_vmem [thread:$0]  (!%p2909_p13), %s3238_s11, 256, %s502_s20, [#allocation8], %s2738_s30, %s2738_s30, %s2739_s22  }
  0x40   : > { %539 = sbr.rel (%p2897_p10) target bundleno = 2357 (0x935), region = 88 }
  0x45   : > { %2701 = dma.done.wait (%p2901_p11), [#allocation5], 256  }
  0x46   : > { %2703 = vsyncadd (%p2901_p11), [#allocation5], 4294967040 }
  0x47   : > { %2705 = dma.done.wait (%p2901_p11), [#allocation8], 512  }
  0x48   : > { %2707 = vsyncadd (%p2901_p11), [#allocation8], 4294966784  ;;  %p598_p0 = scmp.lt.s32.totalorder %s2726_s27, 1  ;;  %v2741_v0 = vmov 0.0   ;;  %vm2742_vm0 = vmmov 0   ;;  %s3270_s23 = sld [smem:[#allocation21_spill]]  ;;  %v754_v29 = vlaneseq }
  0x49   : > { %2340 = vmatprep.subr.bf16.mxu0 %v2741_v0  ;;  %2344 = vmatprep.mubr.msk.bf16.mxu0 %vm2742_vm0, %v2741_v0  ;;  %s3271_s2 = sld [smem:[#allocation23_spill]]  ;;  %vm632_vm1 = vcmask 261120   ;;  %v2542_v6 = vld [vmem:[#allocation4 + $0x8] sm:$0xff]   ;;  %v2543_v8 = vld [vmem:[#allocation4] sm:$0xff]   ;;  %s2743_s0 = smov 104   ;;  %vm889_vm2 = vcmask 60416  }
  0x4a   : > { %s599_s28 = scalar_select %p598_p0, %s2726_s27, 1  ;;  %2348 = vmatprep.subr.bf16.mxu1 %v2741_v0  ;;  %2352 = vmatprep.mubr.msk.bf16.mxu1 %vm2742_vm0, %v2741_v0  ;;  %v2254_v9 = vld [vmem:[%s3232_s5] ss:$0 sm:$0xff]  ;;  %v2746_v27 = vmov 1983009808   ;;  %v755_v33 = vshrl.u32 %v754_v29, 7 }
  0x4b   : > { %2349 = vmatpush3.bf16.msra.mxu1 %v2542_v6  ;;  %s2744_s26 = smov 120   ;;  %v2266_v15 = vld [vmem:[%s3231_s4] ss:$0 sm:$0xff]  ;;  %s2745_s21 = smov 112   ;;  %v752_v28 = vunpack.c.l.s4 %v2746_v27  ;;  %v2747_v30 = vmov 1934713408  }
  0x4c   : > { %s2253_s18 = sshll.u32 %s599_s28, 3  ;;  %s3272_s28 = sld [smem:[#allocation22_spill]]  ;;  %2350 = vmatprep.subr.bf16.mxu1 %v2741_v0  ;;  %v2258_v21 = vld [vmem:[%s3233_s6] ss:$0 sm:$0xff]  ;;  %v784_v31 = vunpack.c.l.s4 %v2747_v30  ;;  %vm1271_vm3 = vcmask 64512   ;;  %vm1503_vm4 = vcmask 1043456  }
  0x4d   : > { %v753_v32 = vunpack.c.0.s8 %v752_v28  ;;  %s2748_s22 = smov 16   ;;  %s2749_s24 = smov 8   ;;  %vm1842_vm5 = vcmask 130048   ;;  %vm1844_vm6 = vcmask 195584   ;;  %vm2052_vm7 = vcmask 523264  }
  0x4e   : > { %s601_s30 = scalar_lea.vmem %s3270_s23, %s2253_s18  ;;  %v785_v36 = vunpack.c.0.s8 %v784_v31  ;;  %s2750_s23 = smov 24  }
  0x4f   : > { %v2538_v1 = vld [vmem:[%s3271_s2 + $0x8] sm:$0xff]   ;;  %v2539_v2 = vld [vmem:[%s3271_s2] sm:$0xff]   ;;  %2351 = vmatpush3.bf16.msra.mxu1 %v2543_v8  ;;  %v3010_v37 = vsub.s32 %v753_v32, %v755_v33 }
  0x50   : > { %2341 = vmatpush3.bf16.msra.mxu0 %v2538_v1  ;;  %v2966_v3 = vld [vmem:[%s601_s30] sm:$0xff]  ;;  %2364 = vmatprep.subr.bf16.mxu1 %v2741_v0  ;;  %v3012_v43 = vsub.s32 %v785_v36, %v755_v33 }
  0x51   : > { %2342 = vmatprep.subr.bf16.mxu0 %v2741_v0  ;;  %v608_v4 = vpack.c.bf16 %v2966_v3, %v2966_v3 }
  0x52   : > { %s3273_s18 = smov %s3272_s28  ;;  %v2540_v5 = vld [vmem:[%s3272_s28 + $0x8] sm:$0xff]   ;;  %s595_s28 = sand.u32 1, %s2718_s25  }
  0x53   : > { %v2541_v7 = vld [vmem:[%s3273_s18] sm:$0xff]   ;;  %2353 = vmatmul.mubr.msk.bf16.vlgmr.msra.gmra.mxu1 %vm632_vm1, %v608_v4  ;;  %s2128_s3 = scalar_lea.sflag [#allocation6], %s595_s28 }
  0x54   : > { %2343 = vmatpush3.bf16.msra.mxu0 %v2539_v2  ;;  %2366 = vmatprep.mubr.msk.bf16.mxu1 %vm2742_vm0, %v2741_v0 }
  0x55   : > { %2356 = vmatprep.subr.bf16.mxu0 %v2741_v0 }
  0x57   : > { %2345 = vmatmul.mubr.msk.bf16.vlgmr.msra.gmra.mxu0 %vm632_vm1, %v608_v4 }
  0x58   : > { %2357 = vmatpush3.bf16.msra.mxu0 %v2540_v5  ;;  %2360 = vmatprep.mubr.msk.bf16.mxu0 %vm2742_vm0, %v2741_v0 }
  0x59   : > { %2358 = vmatprep.subr.bf16.mxu0 %v2741_v0 }
  0x5c   : > { %2359 = vmatpush3.bf16.msra.mxu0 %v2541_v7 }
  0x5d   : > { %2370 = vmatprep.subr.bf16.mxu0 %v2741_v0 }
  0x5f   : > { %2361 = vmatmul.mubr.msk.bf16.vlgmr.msra.gmra.mxu0 %vm632_vm1, %v608_v4 }
  0x60   : > { %2372 = vmatprep.mubr.msk.bf16.mxu0 %vm2742_vm0, %v2741_v0 }
 0x113   : > { %v733_v22 = vpop.f32.mrf.mxu1 }
 0x114   : > { %v3005_v23 = vadd.f32 %v2258_v21, %v733_v22 }
 0x115   : > { %v2354_v24 = vpop.f32.mrf.mxu1 }
 0x117   : > { %v670_v10 = vpop.f32.mrf.mxu0  ;;  %v736_v25 = vpop.f32.mrf.mxu1 }
 0x118   : > { %v671_v11 = vadd.f32 %v2254_v9, %v670_v10 }
 0x119   : > { %v2346_v12 = vpop.f32.mrf.mxu0  ;;  %v2355_v26 = vpop.f32.mrf.mxu1 }
 0x11a   : > { %746 = vrot.lane.b32.xlu1 %v671_v11, %s2743_s0  ;;  %740 = vrot.lane.b32.xlu0 %v671_v11, %s2744_s26 }
 0x11b   : > { %v673_v13 = vpop.f32.mrf.mxu0 }
 0x11d   : > { %v2347_v14 = vpop.f32.mrf.mxu0 }
 0x11e   : > { %743 = vrot.lane.b32.xlu0 %v671_v11, %s2745_s21 }
 0x11f   : > { %v1111_v16 = vpop.f32.mrf.mxu0 }
 0x120   : > { %v2997_v17 = vadd.f32 %v2266_v15, %v1111_v16 }
 0x121   : > { %v2362_v18 = vpop.f32.mrf.mxu0 }
 0x122   : > { %1121 = vrot.lane.b32.xlu0 %v2997_v17, %s2745_s21  ;;  %1118 = vrot.lane.b32.xlu1 %v2997_v17, %s2744_s26 }
 0x123   : > { %v1114_v19 = vpop.f32.mrf.mxu0 }
 0x125   : > { %v2363_v20 = vpop.f32.mrf.mxu0 }
 0x126   : > { %1124 = vrot.lane.b32.xlu1 %v2997_v17, %s2743_s0  ;;  %895 = vrot.lane.b32.xlu0 %v3005_v23, %s2744_s26  ;;  %s2301_s26 = sshll.u32 %s2726_s27, 7 }
 0x127   : > { %s2140_s2 = scalar_lea.hbm %s3244_s17, %s2301_s26 }
 0x12a   : > { %898 = vrot.lane.b32.xlu1 %v3005_v23, %s2745_s21  ;;  %901 = vrot.lane.b32.xlu0 %v3005_v23, %s2743_s0 }
 0x18c   : > { %v747_v34 = vpop.permute.xlu1 %746  ;;  %v741_v35 = vpop.permute.xlu0 %740 }
 0x18d   : > { %v765_v38 = vcombine.low %v741_v35, %v747_v34  ;;  %v766_v39 = vcombine.high %v741_v35, %v747_v34 }
 0x18f   : > { %v773_v44 = vrot.slane %v765_v38, %v3010_v37  ;;  %v780_v45 = vrot.slane %v766_v39, %v3010_v37 }
 0x190   : > { %v744_v40 = vpop.permute.xlu0 %743 }
 0x191   : > { %v749_v41 = vcombine.low %v671_v11, %v744_v40  ;;  %v750_v42 = vcombine.high %v671_v11, %v744_v40 }
 0x193   : > { %v757_v46 = vrot.slane %v749_v41, %v3010_v37  ;;  %v764_v47 = vrot.slane %v750_v42, %v3010_v37 }
 0x194   : > { %v1119_v48 = vpop.permute.xlu1 %1118  ;;  %v1122_v53 = vpop.permute.xlu0 %1121 }
 0x195   : > { %v781_v49 = vcombine.low %v757_v46, %v773_v44  ;;  %v782_v50 = vcombine.high %v757_v46, %v773_v44  ;;  %v797_v51 = vcombine.low %v764_v47, %v780_v45  ;;  %v798_v52 = vcombine.high %v764_v47, %v780_v45 }
 0x196   : > { %v1127_v58 = vcombine.low %v2997_v17, %v1122_v53  ;;  %v1128_v59 = vcombine.high %v2997_v17, %v1122_v53 }
 0x197   : > { %v789_v54 = vrot.slane %v781_v49, %v3012_v43  ;;  %v796_v55 = vrot.slane %v782_v50, %v3012_v43  ;;  %v805_v56 = vrot.slane %v797_v51, %v3012_v43  ;;  %v812_v57 = vrot.slane %v798_v52, %v3012_v43 }
 0x198   : > { %v1125_v60 = vpop.permute.xlu1 %1124  ;;  %v1135_v9 = vrot.slane %v1127_v58, %v3010_v37  ;;  %v1142_v10 = vrot.slane %v1128_v59, %v3010_v37 }
 0x199   : > { %v817_v61 = vcombine.low %v789_v54, %v796_v55  ;;  %v2262_v62 = vcombine.high %v789_v54, %v796_v55  ;;  %v833_v63 = vcombine.low %v805_v56, %v812_v57  ;;  %v2263_v1 = vcombine.high %v805_v56, %v812_v57 }
 0x19a   : > { %v1143_v2 = vcombine.low %v1119_v48, %v1125_v60  ;;  %v1144_v4 = vcombine.high %v1119_v48, %v1125_v60 }
 0x19b   : > { %v824_v5 = vrot.slane %v817_v61, %v3010_v37  ;;  %v832_v6 = vrot.slane %v2262_v62, %v3010_v37  ;;  %v840_v7 = vrot.slane %v833_v63, %v3010_v37  ;;  %v848_v8 = vrot.slane %v2263_v1, %v3010_v37 }
 0x19c   : > { %v1151_v11 = vrot.slane %v1143_v2, %v3010_v37  ;;  %v1158_v12 = vrot.slane %v1144_v4, %v3010_v37 }
 0x19d   : > { %v849_v13 = vcombine.low %v824_v5, %v832_v6  ;;  %v850_v14 = vcombine.high %v824_v5, %v832_v6  ;;  %v865_v15 = vcombine.low %v840_v7, %v848_v8  ;;  %v866_v16 = vcombine.high %v840_v7, %v848_v8 }
 0x19e   : > { %v1159_v17 = vcombine.low %v1135_v9, %v1151_v11  ;;  %v1160_v18 = vcombine.high %v1135_v9, %v1151_v11  ;;  %v1175_v19 = vcombine.low %v1142_v10, %v1158_v12  ;;  %v1176_v20 = vcombine.high %v1142_v10, %v1158_v12  ;;  %v896_v10 = vpop.permute.xlu0 %895  ;;  %v899_v11 = vpop.permute.xlu1 %898 }
 0x19f   : > { %v857_v21 = vrot.slane %v849_v13, %v3012_v43  ;;  %v864_v22 = vrot.slane %v850_v14, %v3012_v43  ;;  %v873_v24 = vrot.slane %v865_v15, %v3012_v43  ;;  %v880_v25 = vrot.slane %v866_v16, %v3012_v43 }
 0x1a0   : > { %v1167_v26 = vrot.slane %v1159_v17, %v3012_v43  ;;  %v1174_v27 = vrot.slane %v1160_v18, %v3012_v43  ;;  %v1183_v28 = vrot.slane %v1175_v19, %v3012_v43  ;;  %v1190_v29 = vrot.slane %v1176_v20, %v3012_v43 }
 0x1a1   : > { %v881_v30 = vcombine.low %v857_v21, %v873_v24  ;;  %v882_v31 = vcombine.high %v857_v21, %v873_v24  ;;  %v883_v32 = vcombine.low %v864_v22, %v880_v25  ;;  %v884_v33 = vcombine.high %v864_v22, %v880_v25 }
 0x1a2   : > { %v1195_v34 = vcombine.low %v1167_v26, %v1174_v27  ;;  %v2270_v35 = vcombine.high %v1167_v26, %v1174_v27  ;;  %v1211_v36 = vcombine.low %v1183_v28, %v1190_v29  ;;  %v2271_v38 = vcombine.high %v1183_v28, %v1190_v29  ;;  %v902_v14 = vpop.permute.xlu0 %901 }
 0x1a3   : > { %v885_v39 = vpack.c.bf16 %v881_v30, %v881_v30  ;;  %v886_v40 = vpack.c.bf16 %v882_v31, %v882_v31  ;;  %v887_v41 = vpack.c.bf16 %v883_v32, %v883_v32  ;;  %v888_v42 = vpack.c.bf16 %v884_v33, %v884_v33 }
 0x1a4   : > { %v1202_v44 = vrot.slane %v1195_v34, %v3010_v37  ;;  %v1210_v45 = vrot.slane %v2270_v35, %v3010_v37  ;;  %v1218_v46 = vrot.slane %v1211_v36, %v3010_v37  ;;  %v1226_v47 = vrot.slane %v2271_v38, %v3010_v37 }
 0x1a5   : > { %890 = vst.msk [vmem:[#allocation2] sm:$0xf] %vm889_vm2, %v885_v39  ;;  %891 = vst.msk [vmem:[#allocation2 + $0x4] sm:$0xf] %vm889_vm2, %v886_v40  ;;  %v904_v12 = vcombine.low %v3005_v23, %v899_v11  ;;  %v905_v13 = vcombine.high %v3005_v23, %v899_v11  ;;  %v920_v15 = vcombine.low %v896_v10, %v902_v14 }
 0x1a6   : > { %892 = vst.msk [vmem:[#allocation2 + $0x8] sm:$0xf] %vm889_vm2, %v887_v41  ;;  %893 = vst.msk [vmem:[#allocation2 + $0xc] sm:$0xf] %vm889_vm2, %v888_v42  ;;  %v1227_v48 = vcombine.low %v1202_v44, %v1210_v45  ;;  %v1243_v49 = vcombine.low %v1218_v46, %v1226_v47  ;;  %v1228_v56 = vcombine.high %v1202_v44, %v1210_v45 }
 0x1a7   : > { %v1244_v57 = vcombine.high %v1218_v46, %v1226_v47  ;;  %v921_v16 = vcombine.high %v896_v10, %v902_v14  ;;  %v912_v17 = vrot.slane %v904_v12, %v3010_v37  ;;  %v919_v18 = vrot.slane %v905_v13, %v3010_v37 }
 0x1a8   : > { %v1235_v50 = vrot.slane %v1227_v48, %v3012_v43  ;;  %v1251_v51 = vrot.slane %v1243_v49, %v3012_v43  ;;  %v1242_v1 = vrot.slane %v1228_v56, %v3012_v43  ;;  %v928_v19 = vrot.slane %v920_v15, %v3010_v37 }
 0x1a9   : > { %v1258_v2 = vrot.slane %v1244_v57, %v3012_v43  ;;  %v935_v20 = vrot.slane %v921_v16, %v3010_v37 }
 0x1aa   : > { %v1259_v58 = vcombine.low %v1235_v50, %v1251_v51  ;;  %v1260_v59 = vcombine.high %v1235_v50, %v1251_v51  ;;  %v936_v21 = vcombine.low %v912_v17, %v928_v19  ;;  %v937_v22 = vcombine.high %v912_v17, %v928_v19 }
 0x1ab   : > { %v1261_v6 = vcombine.low %v1242_v1, %v1258_v2  ;;  %v1262_v7 = vcombine.high %v1242_v1, %v1258_v2  ;;  %v952_v24 = vcombine.low %v919_v18, %v935_v20  ;;  %v953_v25 = vcombine.high %v919_v18, %v935_v20 }
 0x1ac   : > { %v1267_v52 = vld [vmem:[#allocation2] sm:$0xf]  ;;  %v1268_v53 = vld [vmem:[#allocation2 + $0x4] sm:$0xf]  ;;  %v1263_v62 = vpack.c.bf16 %v1259_v58, %v1259_v58  ;;  %v1264_v63 = vpack.c.bf16 %v1260_v59, %v1260_v59  ;;  %v944_v26 = vrot.slane %v936_v21, %v3012_v43  ;;  %v951_v27 = vrot.slane %v937_v22, %v3012_v43 }
 0x1ad   : > { %v1276_v54 = vsel %vm1271_vm3, %v1267_v52, 0  ;;  %v1322_v55 = vsel %vm1271_vm3, %v1268_v53, 0  ;;  %v1269_v60 = vld [vmem:[#allocation2 + $0x8] sm:$0xf]  ;;  %v1270_v61 = vld [vmem:[#allocation2 + $0xc] sm:$0xf]  ;;  %v1265_v8 = vpack.c.bf16 %v1261_v6, %v1261_v6  ;;  %v1266_v9 = vpack.c.bf16 %v1262_v7, %v1262_v7 }
 0x1ae   : > { %2365 = vmatpush3.bf16.xpose.msra.mxu1 %v1276_v54  ;;  %2371 = vmatpush3.bf16.xpose.msra.mxu0 %v1322_v55  ;;  %v1368_v4 = vsel %vm1271_vm3, %v1269_v60, 0  ;;  %v1414_v5 = vsel %vm1271_vm3, %v1270_v61, 0  ;;  %v960_v23 = vrot.slane %v952_v24, %v3012_v43  ;;  %v967_v28 = vrot.slane %v953_v25, %v3012_v43 }
 0x1af   : > { %2376 = vmatprep.subr.bf16.mxu1 %v2741_v0  ;;  %2382 = vmatprep.subr.bf16.mxu0 %v2741_v0  ;;  %v972_v29 = vcombine.low %v944_v26, %v951_v27  ;;  %v2264_v30 = vcombine.high %v944_v26, %v951_v27 }
 0x1b0   : > { %v988_v31 = vcombine.low %v960_v23, %v967_v28  ;;  %v2265_v32 = vcombine.high %v960_v23, %v967_v28 }
 0x1b1   : > { %v979_v33 = vrot.slane %v972_v29, %v3010_v37  ;;  %v987_v34 = vrot.slane %v2264_v30, %v3010_v37 }
 0x1b2   : > { %v995_v35 = vrot.slane %v988_v31, %v3010_v37  ;;  %v1003_v36 = vrot.slane %v2265_v32, %v3010_v37 }
 0x1b3   : > { %v1004_v38 = vcombine.low %v979_v33, %v987_v34  ;;  %v1005_v39 = vcombine.high %v979_v33, %v987_v34 }
 0x1b4   : > { %v1020_v40 = vcombine.low %v995_v35, %v1003_v36  ;;  %v1021_v41 = vcombine.high %v995_v35, %v1003_v36 }
 0x1b5   : > { %2367 = vmatmul.mubr.msk.bf16.vlgmr.msra.gmra.mxu1 %vm1271_vm3, %v1263_v62  ;;  %2373 = vmatmul.mubr.msk.bf16.vlgmr.msra.gmra.mxu0 %vm1271_vm3, %v1264_v63  ;;  %v1012_v42 = vrot.slane %v1004_v38, %v3012_v43  ;;  %v1019_v44 = vrot.slane %v1005_v39, %v3012_v43 }
 0x1b6   : > { %2377 = vmatpush3.bf16.xpose.msra.mxu1 %v1368_v4  ;;  %2383 = vmatpush3.bf16.xpose.msra.mxu0 %v1414_v5  ;;  %v1028_v45 = vrot.slane %v1020_v40, %v3012_v43  ;;  %v1035_v46 = vrot.slane %v1021_v41, %v3012_v43 }
 0x1b7   : > { %2378 = vmatprep.mubr.msk.bf16.mxu1 %vm2742_vm0, %v2741_v0  ;;  %2384 = vmatprep.mubr.msk.bf16.mxu0 %vm2742_vm0, %v2741_v0 }
 0x1b8   : > { %2388 = vmatprep.subr.bf16.mxu1 %v2741_v0  ;;  %2394 = vmatprep.subr.bf16.mxu0 %v2741_v0  ;;  %v1036_v47 = vcombine.low %v1012_v42, %v1028_v45  ;;  %v1037_v48 = vcombine.high %v1012_v42, %v1028_v45  ;;  %v1038_v49 = vcombine.low %v1019_v44, %v1035_v46 }
 0x1b9   : > { %v1039_v50 = vcombine.high %v1019_v44, %v1035_v46 }
 0x1ba   : > { %v1040_v51 = vpack.c.bf16 %v1036_v47, %v1036_v47  ;;  %v1041_v52 = vpack.c.bf16 %v1037_v48, %v1037_v48  ;;  %v1042_v53 = vpack.c.bf16 %v1038_v49, %v1038_v49 }
 0x1bb   : > { %v1043_v54 = vpack.c.bf16 %v1039_v50, %v1039_v50 }
 0x1bc   : > { %1044 = vst.msk [vmem:[#allocation3] sm:$0xf] %vm889_vm2, %v1040_v51  ;;  %1045 = vst.msk [vmem:[#allocation3 + $0x4] sm:$0xf] %vm889_vm2, %v1041_v52 }
 0x1bd   : > { %2379 = vmatmul.mubr.msk.bf16.vlgmr.msra.gmra.mxu1 %vm1271_vm3, %v1265_v8  ;;  %2385 = vmatmul.mubr.msk.bf16.vlgmr.msra.gmra.mxu0 %vm1271_vm3, %v1266_v9  ;;  %1046 = vst.msk [vmem:[#allocation3 + $0x8] sm:$0xf] %vm889_vm2, %v1042_v53  ;;  %1047 = vst.msk [vmem:[#allocation3 + $0xc] sm:$0xf] %vm889_vm2, %v1043_v54 }
 0x1be   : > { %2390 = vmatprep.mubr.msk.bf16.mxu1 %vm2742_vm0, %v2741_v0  ;;  %2396 = vmatprep.mubr.msk.bf16.mxu0 %vm2742_vm0, %v2741_v0 }
 0x1c3   : > { %v1492_v55 = vld [vmem:[#allocation3] sm:$0xf]  ;;  %v1493_v56 = vld [vmem:[#allocation3 + $0x4] sm:$0xf] }
 0x1c4   : > { %v1505_v57 = vsel %vm1503_vm4, %v1492_v55, 0  ;;  %v1551_v58 = vsel %vm1503_vm4, %v1493_v56, 0  ;;  %v1494_v30 = vld [vmem:[#allocation3 + $0x8] sm:$0xf]  ;;  %v1495_v34 = vld [vmem:[#allocation3 + $0xc] sm:$0xf] }
 0x1c5   : > { %2389 = vmatpush3.bf16.msra.mxu1 %v1505_v57  ;;  %2395 = vmatpush3.bf16.msra.mxu0 %v1551_v58  ;;  %v1597_v38 = vsel %vm1503_vm4, %v1494_v30, 0  ;;  %v1643_v39 = vsel %vm1503_vm4, %v1495_v34, 0  ;;  %v2545_v34 = vld [vmem:[#allocation7] sm:$0xff]  }
 0x1c6   : > { %2400 = vmatprep.subr.bf16.mxu1 %v2741_v0  ;;  %2406 = vmatprep.subr.bf16.mxu0 %v2741_v0 }
 0x275   : > { %v1312_v59 = vpop.f32.mrf.mxu1  ;;  %v1358_v60 = vpop.f32.mrf.mxu0 }
 0x276   : > { %v1456_v61 = vsel %vm1271_vm3, %v1312_v59, -inf  ;;  %v1459_v62 = vsel %vm1271_vm3, %v1358_v60, -inf }
 0x277   : > { %1457 = vmax.xlane.f32.xlu1 %v1456_v61  ;;  %v2368_v63 = vpop.f32.mrf.mxu1  ;;  %1460 = vmax.xlane.f32.xlu0 %v1459_v62  ;;  %v2374_v1 = vpop.f32.mrf.mxu0 }
 0x279   : > { %v1315_v2 = vpop.f32.mrf.mxu1  ;;  %v1361_v4 = vpop.f32.mrf.mxu0 }
 0x27b   : > { %v2369_v5 = vpop.f32.mrf.mxu1  ;;  %v2375_v6 = vpop.f32.mrf.mxu0 }
 0x27d   : > { %v1404_v7 = vpop.f32.mrf.mxu1  ;;  %v1450_v8 = vpop.f32.mrf.mxu0 }
 0x27e   : > { %v1462_v9 = vsel %vm1271_vm3, %v1404_v7, -inf  ;;  %v1465_v10 = vsel %vm1271_vm3, %v1450_v8, -inf }
 0x27f   : > { %v2380_v11 = vpop.f32.mrf.mxu1  ;;  %1463 = vmax.xlane.f32.xlu0 %v1462_v9  ;;  %1466 = vmax.xlane.f32.xlu1 %v1465_v10  ;;  %v2386_v12 = vpop.f32.mrf.mxu0 }
 0x281   : > { %v1407_v13 = vpop.f32.mrf.mxu1  ;;  %v1453_v14 = vpop.f32.mrf.mxu0 }
 0x283   : > { %v2381_v15 = vpop.f32.mrf.mxu1  ;;  %v2387_v16 = vpop.f32.mrf.mxu0 }
 0x300   : > { %v1458_v17 = vpop.xlane.xlu1 %1457  ;;  %v1461_v18 = vpop.xlane.xlu0 %1460 }
 0x301   : > { %v1468_v19 = vsub.f32 %v1312_v59, %v1458_v17  ;;  %v1469_v20 = vsub.f32 %v1358_v60, %v1461_v18 }
 0x303   : > { %v1472_v21 = vmul.f32 1.442695, %v1468_v19  ;;  %v1474_v22 = vmul.f32 1.442695, %v1469_v20 }
 0x305   : > { %2552 = vpow2.f32 %v1472_v21 }
 0x306   : > { %2554 = vpow2.f32 %v1474_v22 }
 0x308   : > { %v1464_v24 = vpop.xlane.xlu0 %1463  ;;  %v1467_v25 = vpop.xlane.xlu1 %1466 }
 0x309   : > { %v1470_v26 = vsub.f32 %v1404_v7, %v1464_v24  ;;  %v1471_v27 = vsub.f32 %v1450_v8, %v1467_v25 }
 0x30b   : > { %v1476_v23 = vmul.f32 1.442695, %v1470_v26  ;;  %v1478_v28 = vmul.f32 1.442695, %v1471_v27  ;;  %v2544_v26 = vld [vmem:[#allocation7 + $0x8] sm:$0xff]  }
 0x30d   : > { %2556 = vpow2.f32 %v1476_v23 }
 0x30e   : > { %2558 = vpow2.f32 %v1478_v28 }
 0x312   : > { %v2553_v29 = vpop.eup %2552 }
 0x313   : > { %v2555_v31 = vpop.eup %2554  ;;  %v1480_v32 = vsel %vm1271_vm3, %v2553_v29, 0.0  ;;  %v1496_v33 = vpack.c.bf16 %v2553_v29, %v2553_v29 }
 0x314   : > { %1481 = vadd.xlane.f32.xlu0 %v1480_v32  ;;  %v1483_v35 = vsel %vm1271_vm3, %v2555_v31, 0.0  ;;  %v1497_v36 = vpack.c.bf16 %v2555_v31, %v2555_v31 }
 0x315   : > { %1484 = vadd.xlane.f32.xlu1 %v1483_v35  ;;  %2391 = vmatmul.mubr.msk.bf16.vlgmr.msra.gmra.mxu1 %vm1271_vm3, %v1496_v33 }
 0x316   : > { %2397 = vmatmul.mubr.msk.bf16.vlgmr.msra.gmra.mxu0 %vm1271_vm3, %v1497_v36  ;;  %2401 = vmatpush3.bf16.msra.mxu1 %v1597_v38 }
 0x317   : > { %2407 = vmatpush3.bf16.msra.mxu0 %v1643_v39  ;;  %2402 = vmatprep.mubr.msk.bf16.mxu1 %vm2742_vm0, %v2741_v0 }
 0x318   : > { %2408 = vmatprep.mubr.msk.bf16.mxu0 %vm2742_vm0, %v2741_v0  ;;  %2412 = vmatprep.subr.bf16.mxu1 %v2741_v0 }
 0x319   : > { %2420 = vmatprep.subr.bf16.mxu0 %v2741_v0 }
 0x31a   : > { %v2557_v40 = vpop.eup %2556 }
 0x31b   : > { %v2559_v41 = vpop.eup %2558  ;;  %v1486_v42 = vsel %vm1271_vm3, %v2557_v40, 0.0  ;;  %v1498_v44 = vpack.c.bf16 %v2557_v40, %v2557_v40 }
 0x31c   : > { %1487 = vadd.xlane.f32.xlu0 %v1486_v42  ;;  %v1489_v45 = vsel %vm1271_vm3, %v2559_v41, 0.0  ;;  %v1499_v46 = vpack.c.bf16 %v2559_v41, %v2559_v41 }
 0x31d   : > { %1490 = vadd.xlane.f32.xlu1 %v1489_v45  ;;  %2403 = vmatmul.mubr.msk.bf16.vlgmr.msra.gmra.mxu1 %vm1271_vm3, %v1498_v44 }
 0x31e   : > { %2409 = vmatmul.mubr.msk.bf16.vlgmr.msra.gmra.mxu0 %vm1271_vm3, %v1499_v46  ;;  %2416 = vmatprep.mubr.msk.bf16.mxu1 %vm2742_vm0, %v2741_v0 }
 0x31f   : > { %2424 = vmatprep.mubr.msk.bf16.mxu0 %vm2742_vm0, %v2741_v0  ;;  %2413 = vmatpush3.bf16.msra.mxu1 %v2544_v26 }
 0x320   : > { %2414 = vmatprep.subr.bf16.mxu1 %v2741_v0 }
 0x323   : > { %2415 = vmatpush3.bf16.msra.mxu1 %v2545_v34 }
 0x324   : > { %2428 = vmatprep.subr.bf16.mxu1 %v2741_v0 }
 0x39d   : > { %v1482_v47 = vpop.xlane.xlu0 %1481 }
 0x39e   : > { %v1485_v48 = vpop.xlane.xlu1 %1484  ;;  %2560 = vrcp.f32 %v1482_v47 }
 0x39f   : > { %2562 = vrcp.f32 %v1485_v48 }
 0x3a5   : > { %v1488_v49 = vpop.xlane.xlu0 %1487 }
 0x3a6   : > { %v1491_v50 = vpop.xlane.xlu1 %1490  ;;  %2564 = vrcp.f32 %v1488_v49 }
 0x3a7   : > { %2566 = vrcp.f32 %v1491_v50 }
 0x3ab   : > { %v2561_v57 = vpop.eup %2560 }
 0x3ac   : > { %v2563_v59 = vpop.eup %2562 }
 0x3b3   : > { %v2565_v61 = vpop.eup %2564 }
 0x3b4   : > { %v2567_v63 = vpop.eup %2566 }
 0x3d5   : > { %v1541_v51 = vpop.f32.mrf.mxu1 }
 0x3d6   : > { %v1587_v52 = vpop.f32.mrf.mxu0  ;;  %v1689_v1 = vmul.f32 %v2561_v57, %v1541_v51 }
 0x3d7   : > { %v2392_v53 = vpop.f32.mrf.mxu1  ;;  %v1690_v5 = vmul.f32 %v2563_v59, %v1587_v52 }
 0x3d8   : > { %v2398_v54 = vpop.f32.mrf.mxu0 }
 0x3d9   : > { %v1544_v55 = vpop.f32.mrf.mxu1 }
 0x3da   : > { %v1590_v56 = vpop.f32.mrf.mxu0 }
 0x3db   : > { %v2393_v58 = vpop.f32.mrf.mxu1 }
 0x3dc   : > { %v2399_v60 = vpop.f32.mrf.mxu0  ;;  %v2282_v58 = vld [vmem:[%s3235_s8] ss:$0 sm:$0xff] }
 0x3dd   : > { %v1633_v62 = vpop.f32.mrf.mxu1 }
 0x3de   : > { %v1691_v2 = vmul.f32 %v2565_v61, %v1633_v62  ;;  %v1679_v4 = vpop.f32.mrf.mxu0 }
 0x3df   : > { %v1692_v6 = vmul.f32 %v2567_v63, %v1679_v4  ;;  %v2404_v7 = vpop.f32.mrf.mxu1 }
 0x3e0   : > { %v1693_v8 = vcombine.low %v1689_v1, %v1691_v2  ;;  %v1694_v9 = vcombine.high %v1689_v1, %v1691_v2  ;;  %v2410_v10 = vpop.f32.mrf.mxu0 }
 0x3e1   : > { %v1709_v11 = vcombine.low %v1690_v5, %v1692_v6  ;;  %v1710_v12 = vcombine.high %v1690_v5, %v1692_v6  ;;  %v1636_v13 = vpop.f32.mrf.mxu1  ;;  %v2547_v10 = vld [vmem:[#allocation9] sm:$0xff]  }
 0x3e2   : > { %v1701_v14 = vrot.slane %v1693_v8, %v3010_v37  ;;  %v1708_v15 = vrot.slane %v1694_v9, %v3010_v37  ;;  %v1682_v16 = vpop.f32.mrf.mxu0  ;;  %v2546_v9 = vld [vmem:[#allocation9 + $0x8] sm:$0xff]  }
 0x3e3   : > { %v1717_v17 = vrot.slane %v1709_v11, %v3010_v37  ;;  %v1724_v18 = vrot.slane %v1710_v12, %v3010_v37  ;;  %v2405_v19 = vpop.f32.mrf.mxu1  ;;  %2421 = vmatpush3.bf16.msra.mxu0 %v2546_v9  ;;  %v2549_v11 = vld [vmem:[%s3240_s13 + $0x10] sm:$0xff]   ;;  %v2286_v16 = vld [vmem:[%s3236_s9] ss:$0 sm:$0xff] }
 0x3e4   : > { %v2411_v20 = vpop.f32.mrf.mxu0  ;;  %2422 = vmatprep.subr.bf16.mxu0 %v2741_v0 }
 0x3e5   : > { %v1725_v21 = vcombine.low %v1701_v14, %v1717_v17  ;;  %v1726_v22 = vcombine.high %v1701_v14, %v1717_v17  ;;  %v1741_v24 = vcombine.low %v1708_v15, %v1724_v18  ;;  %v1742_v25 = vcombine.high %v1708_v15, %v1724_v18  ;;  %v2287_v18 = vld [vmem:[%s3237_s10] ss:$0 sm:$0xff] }
 0x3e7   : > { %v1733_v27 = vrot.slane %v1725_v21, %v3012_v43  ;;  %v1740_v23 = vrot.slane %v1726_v22, %v3012_v43  ;;  %v1749_v28 = vrot.slane %v1741_v24, %v3012_v43  ;;  %v1756_v29 = vrot.slane %v1742_v25, %v3012_v43  ;;  %2423 = vmatpush3.bf16.msra.mxu0 %v2547_v10  ;;  %v2550_v22 = vld [vmem:[%s3240_s13 + $0x8] sm:$0xff]   ;;  %v2551_v24 = vld [vmem:[%s3240_s13] sm:$0xff]  }
 0x3e8   : > { %v2288_v25 = vld [vmem:[%s3239_s12] ss:$0 sm:$0xff] }
 0x3e9   : > { %v1761_v30 = vcombine.low %v1733_v27, %v1740_v23  ;;  %v2280_v31 = vcombine.high %v1733_v27, %v1740_v23  ;;  %v1777_v32 = vcombine.low %v1749_v28, %v1756_v29  ;;  %v2281_v33 = vcombine.high %v1749_v28, %v1756_v29 }
 0x3eb   : > { %v1768_v35 = vrot.slane %v1761_v30, %v3010_v37  ;;  %v1776_v36 = vrot.slane %v2280_v31, %v3010_v37  ;;  %v1784_v38 = vrot.slane %v1777_v32, %v3010_v37  ;;  %v1792_v39 = vrot.slane %v2281_v33, %v3010_v37 }
 0x3ed   : > { %v1794_v40 = vcombine.high %v1768_v35, %v1776_v36  ;;  %v1810_v41 = vcombine.high %v1784_v38, %v1792_v39  ;;  %v1793_v42 = vcombine.low %v1768_v35, %v1776_v36  ;;  %v1809_v44 = vcombine.low %v1784_v38, %v1792_v39 }
 0x3ef   : > { %v1808_v45 = vrot.slane %v1794_v40, %v3012_v43  ;;  %v1824_v46 = vrot.slane %v1810_v41, %v3012_v43  ;;  %v1801_v47 = vrot.slane %v1793_v42, %v3012_v43  ;;  %v1817_v48 = vrot.slane %v1809_v44, %v3012_v43 }
 0x3f1   : > { %v1827_v49 = vcombine.low %v1808_v45, %v1824_v46  ;;  %v1826_v50 = vcombine.high %v1801_v47, %v1817_v48  ;;  %v1825_v51 = vcombine.low %v1801_v47, %v1817_v48  ;;  %v1828_v37 = vcombine.high %v1808_v45, %v1824_v46 }
 0x3f3   : > { %1834 = vrot.lane.b32.xlu1 %v1827_v49, %s2748_s22  ;;  %1830 = vrot.lane.b32.xlu0 %v1826_v50, %s2749_s24  ;;  %s2252_s22 = sshll.u32 %s595_s28, 3  ;;  %v2298_v50 = vld [vmem:[%s3242_s15] ss:$0 sm:$0xff] }
 0x3f4   : > { %s597_s20 = scalar_lea.vmem [#allocation10], %s2252_s22 }
 0x3f5   : > { %s2142_s19 = sshll.u32 %s597_s20, 4  ;;  %s2143_s19 = int_to_ptr.vmem [resolvable:$true] %s2142_s19 }
 0x3f6   : > { %s2650_s24 = scalar_lea.vmem %s2143_s19, 128 }
 0x3f7   : > { %1838 = vrot.lane.b32.xlu1 %v1828_v37, %s2750_s23  ;;  %v2299_v37 = vld [vmem:[%s3243_s16] ss:$0 sm:$0xff]  ;;  %p2651_p10 = scmp.ne.s32.totalorder %s2143_s19, %s2650_s24  ;;  %s2751_s23 = smov [#allocation10]  }
 0x3f8   : > { %s2654_s30 = sshll.u32 %s2751_s23, 4  ;;  %s2655_s30 = int_to_ptr.vmem [resolvable:$false] %s2654_s30 }
 0x3f9   : > { %p2652_p11 = pnand %p2651_p10, %p2882_p4  ;;  %s2656_s27 = scalar_lea.vmem %s2655_s30, 256 }
 0x3fa   : > { %p2657_p3 = scmp.lt.s32.totalorder %s2143_s19, %s2655_s30  ;;  %p2658_p6 = scmp.lt.s32.totalorder %s2656_s27, %s2650_s24 }
 0x3fb   : > { %p2653_p13 = pneg %p2652_p11 }
 0x3fc   : > { %p2659_p7 = por %p2658_p6, %p2657_p3 }
 0x3fe   : > { %p2660_p9 = pnand %p2659_p7, %p2653_p13 }
 0x465   : > { %v1835_v52 = vpop.permute.xlu1 %1834  ;;  %v1831_v53 = vpop.permute.xlu0 %1830 }
 0x466   : > { %v1841_v54 = vsel %vm1271_vm3, %v1825_v51, %v1831_v53 }
 0x467   : > { %v1843_v56 = vsel %vm1842_vm5, %v1841_v54, %v1835_v52 }
 0x469   : > { %v1839_v55 = vpop.permute.xlu1 %1838 }
 0x46a   : > { %v1845_v57 = vsel %vm1844_vm6, %v1843_v56, %v1839_v55 }
 0x46b   : > { %v1846_v43 = vpack.c.bf16 %v1845_v57, %v1845_v57 }
 0x46d   : > { %2417 = vmatmul.mubr.msk.bf16.vlgmr.msra.gmra.mxu1 %vm632_vm1, %v1846_v43 }
 0x46e   : > { %2436 = vmatprep.mubr.msk.bf16.mxu1 %vm2742_vm0, %v2741_v0 }
 0x52d   : > { %v1907_v59 = vpop.f32.mrf.mxu1 }
 0x52e   : > { %v1908_v60 = vadd.f32 %v2282_v58, %v1907_v59 }
 0x52f   : > { %v2418_v61 = vpop.f32.mrf.mxu1 }
 0x530   : > { %v1913_v62 = vadd.f32 %v1908_v60, %v2966_v3  ;;  %v2548_v3 = vld [vmem:[%s3240_s13 + $0x18] sm:$0xff]  }
 0x531   : > { %v1910_v63 = vpop.f32.mrf.mxu1  ;;  %2429 = vmatpush3.bf16.msra.mxu1 %v2548_v3 }
 0x532   : > { %v1916_v1 = vsel %vm632_vm1, %v1913_v62, 0.0  ;;  %2430 = vmatprep.subr.bf16.mxu1 %v2741_v0 }
 0x533   : > { %1917 = vadd.xlane.f32.xlu0 %v1916_v1  ;;  %v2419_v2 = vpop.f32.mrf.mxu1 }
 0x535   : > { %2431 = vmatpush3.bf16.msra.mxu1 %v2549_v11 }
 0x536   : > { %2432 = vmatprep.subr.bf16.mxu1 %v2741_v0 }
 0x539   : > { %2433 = vmatpush3.bf16.msra.mxu1 %v2550_v22 }
 0x53a   : > { %2434 = vmatprep.subr.bf16.mxu1 %v2741_v0  ;;  %v2292_v0 = vld [vmem:[%s3241_s14] ss:$0 sm:$0xff] }
 0x53d   : > { %2435 = vmatpush3.bf16.msra.mxu1 %v2551_v24 }
 0x5bc   : > { %v1918_v4 = vpop.xlane.xlu0 %1917 }
 0x5bd   : > { %v1920_v5 = vmul.f32 0.03125, %v1918_v4 }
 0x5bf   : > { %v1921_v6 = vsub.f32 %v1913_v62, %v1920_v5 }
 0x5c1   : > { %v1922_v7 = vmul.f32 %v1921_v6, %v1921_v6 }
 0x5c3   : > { %v1923_v8 = vsel %vm632_vm1, %v1922_v7, 0.0 }
 0x5c4   : > { %1924 = vadd.xlane.f32.xlu1 %v1923_v8 }
 0x64d   : > { %v1925_v12 = vpop.xlane.xlu1 %1924 }
 0x64e   : > { %v1926_v13 = vmul.f32 0.03125, %v1925_v12 }
 0x650   : > { %v1927_v14 = vadd.f32 1e-05, %v1926_v13 }
 0x652   : > { %2568 = vrsqrt.f32 %v1927_v14 }
 0x65f   : > { %v2569_v15 = vpop.eup %2568 }
 0x660   : > { %v1929_v17 = vmul.f32 %v2569_v15, %v1921_v6 }
 0x662   : > { %v1936_v19 = vmul.f32 %v2286_v16, %v1929_v17 }
 0x664   : > { %v1943_v20 = vadd.f32 %v2287_v18, %v1936_v19 }
 0x666   : > { %v1944_v21 = vpack.c.bf16 %v1943_v20, %v1943_v20 }
 0x668   : > { %2425 = vmatmul.mubr.msk.bf16.vlgmr.msra.gmra.mxu0 %vm632_vm1, %v1944_v21 }
 0x728   : > { %v2005_v26 = vpop.f32.mrf.mxu0 }
 0x729   : > { %v2006_v27 = vadd.f32 %v2288_v25, %v2005_v26 }
 0x72a   : > { %v2426_v23 = vpop.f32.mrf.mxu0 }
 0x72b   : > { %v2011_v28 = vmax.f32 %v2006_v27, 0.0 }
 0x72c   : > { %v2008_v29 = vpop.f32.mrf.mxu0 }
 0x72d   : > { %v2012_v30 = vpack.c.bf16 %v2011_v28, %v2011_v28 }
 0x72e   : > { %v2427_v31 = vpop.f32.mrf.mxu0 }
 0x72f   : > { %2437 = vmatmul.mubr.msk.bf16.vlgmr.msra.gmra.mxu1 %vm2052_vm7, %v2012_v30 }
 0x7ef   : > { %v2090_v32 = vpop.f32.mrf.mxu1 }
 0x7f0   : > { %v2091_v33 = vadd.f32 %v2292_v0, %v2090_v32 }
 0x7f1   : > { %v2438_v34 = vpop.f32.mrf.mxu1 }
 0x7f2   : > { %v2096_v35 = vadd.f32 %v2091_v33, %v1943_v20 }
 0x7f3   : > { %v2093_v36 = vpop.f32.mrf.mxu1 }
 0x7f4   : > { %v2099_v38 = vsel %vm632_vm1, %v2096_v35, 0.0 }
 0x7f5   : > { %2100 = vadd.xlane.f32.xlu0 %v2099_v38  ;;  %v2439_v39 = vpop.f32.mrf.mxu1 }
 0x87e   : > { %v2101_v40 = vpop.xlane.xlu0 %2100 }
 0x87f   : > { %v2102_v41 = vmul.f32 0.03125, %v2101_v40 }
 0x881   : > { %v2103_v42 = vsub.f32 %v2096_v35, %v2102_v41 }
 0x883   : > { %v2104_v44 = vmul.f32 %v2103_v42, %v2103_v42 }
 0x885   : > { %v2105_v45 = vsel %vm632_vm1, %v2104_v44, 0.0 }
 0x886   : > { %2106 = vadd.xlane.f32.xlu0 %v2105_v45 }
 0x90f   : > { %v2107_v46 = vpop.xlane.xlu0 %2106 }
 0x910   : > { %v2108_v47 = vmul.f32 0.03125, %v2107_v46 }
 0x912   : > { %v2109_v48 = vadd.f32 1e-05, %v2108_v47 }
 0x914   : > { %2570 = vrsqrt.f32 %v2109_v48 }
 0x921   : > { %v2571_v49 = vpop.eup %2570 }
 0x922   : > { %v2111_v51 = vmul.f32 %v2571_v49, %v2103_v42 }
 0x924   : > { %v2118_v52 = vmul.f32 %v2298_v50, %v2111_v51 }
 0x926   : > { %v2125_v53 = vadd.f32 %v2299_v37, %v2118_v52 }
 0x928   : > { %2126 = vst.msk [vmem:[%s597_s20] sm:$0xff] %vm632_vm1, %v2125_v53 }
 0x929   : > { %2663 = shalt.err (!%p2660_p9)
}
 0x92a   : > { %s2664_s22 = scalar_lea.hbm %s2140_s2, 128  ;;  %s2668_s26 = scalar_lea.hbm %s3244_s17, 256 }
 0x92b   : > { %p2665_p12 = scmp.ne.s32.totalorder %s2140_s2, %s2664_s22  ;;  %p2669_p2 = scmp.lt.s32.totalorder %s2140_s2, %s3244_s17 }
 0x92c   : > { %p2670_p5 = scmp.lt.s32.totalorder %s2668_s26, %s2664_s22 }
 0x92d   : > { %p2666_p1 = pnand %p2665_p12, %p2882_p4 }
 0x92e   : > { %p2671_p0 = por %p2670_p5, %p2669_p2 }
 0x92f   : > { %p2667_p8 = pneg %p2666_p1 }
 0x931   : > { %p2672_p10 = pnand %p2671_p0, %p2667_p8 }
 0x933   : > { %2675 = shalt.err (!%p2672_p10)
}
 0x934   : > { %2452 = dma.vmem_to_hbm [thread:$0]  (%p2882_p4), %s2143_s19, 128, %s2140_s2, %s2128_s3  }
 0x935 PF: > { %s3274_s29 = sld [smem:[#allocation17_spill]] }
 0x936   : > { %s3275_s24 = sld [smem:[#allocation14_spill]] }
 0x937   : > { %s3276_s23 = sld [smem:[#allocation19_spill]] }
 0x93b   : > { %p2474_p11 = scmp.ge.s32.totalorder %s3274_s29, 2 }
 0x93c   : > { %s2154_s30 = sand.u32 1, %s3275_s24  }
 0x93d   : > { %p3277_p13 = scmp.ne.s32.totalorder %s3276_s23, 0  ;;  %s2155_s27 = scalar_lea.sflag [#allocation6], %s2154_s30 }
 0x93f   : > { %p2465_p3 = pnand %p2474_p11, %p3277_p13 }
 0x941   : > { %p2466_p6 = pneg %p2465_p3 }
 0x943   : > { %2709 = dma.done.wait (%p2466_p6), %s2155_s27, 128  }
 0x944   : > { %2711 = vsyncadd (%p2466_p6), %s2155_s27, 4294967168  ;;  %s32_s29 = sadd.s32 1, %s3274_s29   ;;  %s3278_s22 = sld [smem:[#allocation15_spill]] }
 0x945   : > { %p29_p7 = scmp.ge.s32.totalorder %s32_s29, 4   ;;  %s3279_s26 = sld [smem:[#allocation20_spill]] }
 0x946   : > { %s3280_s27 = sld [smem:[#allocation16_spill]]  ;;  %s3282_s24 = smov %s2718_s25 }
 0x947   : > { %s3281_s28 = sld [smem:[#allocation18_spill]]  ;;  %31 = sbr.rel (!%p29_p7) target bundleno = 11 (0xb), region = 140 }
 0x94a   : > { %s3283_s25 = smov %s3278_s22 }
 0x94c   :  { %2160 = vsyncpa [#allocation5], 1 }
 0x94d   :  { %2162 = vsyncpa [#allocation5 + $0x1], 1 }
 0x94e   :  { %2163 = vsyncpa [#allocation8], 1 }
 0x94f   :  { %2164 = vsyncpa [#allocation6], 1 }
 0x950   :  { %2166 = vsyncpa [#allocation6 + $0x1], 1 }

// kernel: tpu_custom_call.1
= control target key start
LH: loop header
LB: loop body
LE: loop exit
PB: predicated region body
PF: predicated region fallthrough
CT: control target
= control target key end

     0   :  { %s3227_s0 = inlined_call_operand.vmem [shape: f32[2,8,32], index: 0, kind: input, shape index: {}]   ;;  %s3228_s1 = inlined_call_operand.vmem [shape: bf16[32,32], index: 1, kind: input, shape index: {}]   ;;  %s3229_s2 = inlined_call_operand.vmem [shape: bf16[32,32], index: 2, kind: input, shape index: {}]   ;;  %s3230_s3 = inlined_call_operand.hbm [shape: bf16[32,32], index: 3, kind: input, shape index: {}]   ;;  %s3231_s4 = inlined_call_operand.vmem [shape: f32[1,32], index: 4, kind: input, shape index: {}]   ;;  %s3232_s5 = inlined_call_operand.vmem [shape: f32[1,32], index: 5, kind: input, shape index: {}]   ;;  %s3233_s6 = inlined_call_operand.vmem [shape: f32[1,32], index: 6, kind: input, shape index: {}]   ;;  %s3234_s7 = inlined_call_operand.hbm [shape: bf16[32,32], index: 7, kind: input, shape index: {}]   ;;  %s3235_s8 = inlined_call_operand.vmem [shape: f32[1,32], index: 8, kind: input, shape index: {}]   ;;  %s3236_s9 = inlined_call_operand.vmem [shape: f32[1,32], index: 9, kind: input, shape index: {}]   ;;  %s3237_s10 = inlined_call_operand.vmem [shape: f32[1,32], index: 10, kind: input, shape index: {}]   ;;  %s3238_s11 = inlined_call_operand.hbm [shape: bf16[32,64], index: 11, kind: input, shape index: {}]   ;;  %s3239_s12 = inlined_call_operand.vmem [shape: f32[1,64], index: 12, kind: input, shape index: {}]   ;;  %s3240_s13 = inlined_call_operand.vmem [shape: bf16[64,32], index: 13, kind: input, shape index: {}]   ;;  %s3241_s14 = inlined_call_operand.vmem [shape: f32[1,32], index: 14, kind: input, shape index: {}]   ;;  %s3242_s15 = inlined_call_operand.vmem [shape: f32[1,32], index: 15, kind: input, shape index: {}]   ;;  %s3243_s16 = inlined_call_operand.vmem [shape: f32[1,32], index: 16, kind: input, shape index: {}]   ;;  %s3244_s17 = inlined_call_operand.hbm [shape: f32[2,8,32], index: 17, kind: output, shape index: {}]  }
   0x1   :  { %3253 = sst [smem:[#allocation21_spill]] %s3227_s0 }
   0x2   :  { %3254 = sst [smem:[#allocation22_spill]] %s3228_s1 }
   0x3   :  { %3255 = sst [smem:[#allocation23_spill]] %s3229_s2 }
   0x4   :  { %3256 = sst [smem:[#allocation24_spill]] %s3230_s3 }
   0x5   :  { %22 = vsyncpa [#allocation5], 0 }
   0x6   :  { %23 = vsyncpa [#allocation8], 0 }
   0x7   :  { %24 = vsyncpa [#allocation6], 0 }
   0x8   :  { %26 = vsyncpa [#allocation6 + $0x1], 0  ;;  %s2842_s24 = smov 0   ;;  %s2844_s25 = smov 0  }
   0x9   :  { %s2846_s26 = smov 0   ;;  %s2848_s27 = smov 0  }
   0xa   :  { %s2850_s28 = smov 0   ;;  %s2852_s29 = smov 0  }
   0xb LB: > { %3257 = sst [smem:[#allocation14_spill]] %s2714_s24  ;;  %s2241_s0 = sadd.s32 4294967295, %s2734_s29   ;;  %s2734_s29 = sphi %s2852_s29, %s32_s29   ;;  %s2730_s28 = sphi %s2850_s28, %s3281_s28   ;;  %s2726_s27 = sphi %s2848_s27, %s3280_s27   ;;  %s2722_s26 = sphi %s2846_s26, %s3279_s26   ;;  %s2718_s25 = sphi %s2844_s25, %s3283_s25   ;;  %s2714_s24 = sphi %s2842_s24, %s3282_s24  }
   0xc   : > { %3258 = sst [smem:[#allocation15_spill]] %s2722_s26  ;;  %s2242_s30 = sadd.s32 4294967294, %s2734_s29  }
   0xd   : > { %3259 = sst [smem:[#allocation16_spill]] %s2730_s28  ;;  %s44_s18 = sadd.s32 1, %s2730_s28 }
   0xe   : > { %3260 = sst [smem:[#allocation17_spill]] %s2734_s29  ;;  %s415_s19 = sadd.s32 1, %s2722_s26 }
   0xf   : > { %p46_p0 = scmp.ge.s32.totalorder %s44_s18, 2  ;;  %p425_p1 = scmp.ne.s32.totalorder %s2722_s26, %s2718_s25 }
  0x10   : > { %p426_p2 = scmp.eq.s32.totalorder %s2241_s0, 1  ;;  %p431_p3 = scmp.ne.s32.totalorder %s2718_s25, %s2714_s24 }
  0x11   : > { %s3285_s18 = smov (%p46_p0, %s44_s18), 0  ;;  %p432_p5 = scmp.eq.s32.totalorder %s2242_s30, 1 }
  0x12   : > { %3261 = sst [smem:[#allocation18_spill]] %s3285_s18  ;;  %p2882_p4 = por %p426_p2, %p425_p1 }
  0x13   : > { %s410_s20 = ssub.s32 %s2730_s28, %s3285_s18  ;;  %p2243_p6 = scmp.ge.s32.totalorder %s2734_s29, 1 }
  0x14   : > { %p413_p7 = scmp.eq.s32.totalorder %s410_s20, 0  ;;  %p2889_p8 = por %p432_p5, %p431_p3 }
  0x15   : > { %p439_p9 = scmp.lt.s32.totalorder %s2734_s29, 3  ;;  %p2901_p11 = scmp.eq.s32.totalorder %s2241_s0, 0 }
  0x16   : > { %s3263_s21 = scalar_select %p2889_p8, 1, 0 }
  0x17   : > { %s2895_s22 = scalar_select %p413_p7, %s2722_s26, %s415_s19  }
  0x18   : > { %3264 = sst [smem:[#allocation19_spill]] %s3263_s21  ;;  %p2897_p10 = pnand %p2243_p6, %p439_p9 }
  0x19   : > { %3265 = sst [smem:[#allocation20_spill]] %s2895_s22  ;;  %s2736_s30 = smov [#allocation7]  }
  0x1a   : > { %p2454_p12 = pneg %p2897_p10  ;;  %s479_s20 = sshll.u32 %s2736_s30, 4  ;;  %s480_s20 = int_to_ptr.vmem [resolvable:$true] %s479_s20 }
  0x1b   : > { %s2737_s19 = smov [#allocation4]   ;;  %s2583_s0 = scalar_lea.vmem %s480_s20, 256 }
  0x1c   : > { %p2909_p13 = pnand %p2901_p11, %p2454_p12  ;;  %s457_s28 = sshll.u32 %s2737_s19, 4  ;;  %s458_s28 = int_to_ptr.vmem [resolvable:$true] %s457_s28 }
  0x1d   : > { %p2584_p1 = scmp.ne.s32.totalorder %s480_s20, %s2583_s0  ;;  %p2591_p5 = scmp.lt.s32.totalorder %s480_s20, %s480_s20 }
  0x1e   : > { %p2574_p0 = pneg %p2909_p13  ;;  %p2592_p6 = scmp.lt.s32.totalorder %s2583_s0, %s2583_s0 }
  0x20   : > { %p2586_p2 = pnand %p2584_p1, %p2574_p0  ;;  %p2593_p7 = por %p2592_p6, %p2591_p5 }
  0x22   : > { %p2587_p3 = pneg %p2586_p2 }
  0x24   : > { %p2594_p9 = pnand %p2593_p7, %p2587_p3 }
  0x26   : > { %2597 = shalt.err (!%p2594_p9)
}
  0x27   : > { %s2738_s30 = smov 64   ;;  %s2739_s22 = smov 4  }
  0x28   : > { %2460 = dma.hbm_to_vmem [thread:$0]  (!%p2909_p13), %s3234_s7, 256, %s480_s20, [#allocation8], %s2738_s30, %s2738_s30, %s2739_s22  }
  0x29   : > { %s2609_s21 = scalar_lea.vmem %s458_s28, 256  ;;  %p2617_p8 = scmp.lt.s32.totalorder %s458_s28, %s458_s28 }
  0x2a   : > { %p2610_p12 = scmp.ne.s32.totalorder %s458_s28, %s2609_s21  ;;  %p2618_p5 = scmp.lt.s32.totalorder %s2609_s21, %s2609_s21 }
  0x2c   : > { %p2612_p1 = pnand %p2610_p12, %p2574_p0  ;;  %p2619_p3 = por %p2618_p5, %p2617_p8 }
  0x2e   : > { %p2613_p2 = pneg %p2612_p1 }
  0x30   : > { %p2620_p6 = pnand %p2619_p3, %p2613_p2 }
  0x32   : > { %2623 = shalt.err (!%p2620_p6)
}
  0x33   : > { %s3269_s3 = sld [smem:[#allocation24_spill]]  ;;  %s2740_s26 = smov [#allocation9]  }
  0x34   : > { %s501_s20 = sshll.u32 %s2740_s26, 4  ;;  %s502_s20 = int_to_ptr.vmem [resolvable:$true] %s501_s20 }
  0x35   : > { %s2635_s19 = scalar_lea.vmem %s502_s20, 256  ;;  %p2643_p1 = scmp.lt.s32.totalorder %s502_s20, %s502_s20 }
  0x36   : > { %p2636_p7 = scmp.ne.s32.totalorder %s502_s20, %s2635_s19  ;;  %p2644_p8 = scmp.lt.s32.totalorder %s2635_s19, %s2635_s19 }
  0x38   : > { %p2638_p9 = pnand %p2636_p7, %p2574_p0  ;;  %p2645_p2 = por %p2644_p8, %p2643_p1 }
  0x39   : > { %2457 = dma.hbm_to_vmem [thread:$0]  (!%p2909_p13), %s3269_s3, 256, %s458_s28, [#allocation5], %s2738_s30, %s2738_s30, %s2739_s22  }
  0x3a   : > { %p2639_p12 = pneg %p2638_p9 }
  0x3c   : > { %p2646_p5 = pnand %p2645_p2, %p2639_p12 }
  0x3e   : > { %2649 = shalt.err (!%p2646_p5)
}
  0x3f   : > { %2463 = dma.hbm_to_vmem [thread:$0]  (!%p2909_p13), %s3238_s11, 256, %s502_s20, [#allocation8], %s2738_s30, %s2738_s30, %s2739_s22  }
  0x40   : > { %539 = sbr.rel (%p2897_p10) target bundleno = 2357 (0x935), region = 88 }
  0x45   : > { %2701 = dma.done.wait (%p2901_p11), [#allocation5], 256  }
  0x46   : > { %2703 = vsyncadd (%p2901_p11), [#allocation5], 4294967040 }
  0x47   : > { %2705 = dma.done.wait (%p2901_p11), [#allocation8], 512  }
  0x48   : > { %2707 = vsyncadd (%p2901_p11), [#allocation8], 4294966784  ;;  %p598_p0 = scmp.lt.s32.totalorder %s2726_s27, 1  ;;  %v2741_v0 = vmov 0.0   ;;  %vm2742_vm0 = vmmov 0   ;;  %s3270_s23 = sld [smem:[#allocation21_spill]]  ;;  %v754_v29 = vlaneseq }
  0x49   : > { %2340 = vmatprep.subr.bf16.mxu0 %v2741_v0  ;;  %2344 = vmatprep.mubr.msk.bf16.mxu0 %vm2742_vm0, %v2741_v0  ;;  %s3271_s2 = sld [smem:[#allocation23_spill]]  ;;  %vm632_vm1 = vcmask 261120   ;;  %v2542_v6 = vld [vmem:[#allocation4 + $0x8] sm:$0xff]   ;;  %v2543_v8 = vld [vmem:[#allocation4] sm:$0xff]   ;;  %s2743_s0 = smov 104   ;;  %vm889_vm2 = vcmask 60416  }
  0x4a   : > { %s599_s28 = scalar_select %p598_p0, %s2726_s27, 1  ;;  %2348 = vmatprep.subr.bf16.mxu1 %v2741_v0  ;;  %2352 = vmatprep.mubr.msk.bf16.mxu1 %vm2742_vm0, %v2741_v0  ;;  %v2254_v9 = vld [vmem:[%s3232_s5] ss:$0 sm:$0xff]  ;;  %v2746_v27 = vmov 1983009808   ;;  %v755_v33 = vshrl.u32 %v754_v29, 7 }
  0x4b   : > { %2349 = vmatpush3.bf16.msra.mxu1 %v2542_v6  ;;  %s2744_s26 = smov 120   ;;  %v2266_v15 = vld [vmem:[%s3231_s4] ss:$0 sm:$0xff]  ;;  %s2745_s21 = smov 112   ;;  %v752_v28 = vunpack.c.l.s4 %v2746_v27  ;;  %v2747_v30 = vmov 1934713408  }
  0x4c   : > { %s2253_s18 = sshll.u32 %s599_s28, 3  ;;  %s3272_s28 = sld [smem:[#allocation22_spill]]  ;;  %2350 = vmatprep.subr.bf16.mxu1 %v2741_v0  ;;  %v2258_v21 = vld [vmem:[%s3233_s6] ss:$0 sm:$0xff]  ;;  %v784_v31 = vunpack.c.l.s4 %v2747_v30  ;;  %vm1271_vm3 = vcmask 64512   ;;  %vm1503_vm4 = vcmask 1043456  }
  0x4d   : > { %v753_v32 = vunpack.c.0.s8 %v752_v28  ;;  %s2748_s22 = smov 16   ;;  %s2749_s24 = smov 8   ;;  %vm1842_vm5 = vcmask 130048   ;;  %vm1844_vm6 = vcmask 195584   ;;  %vm2052_vm7 = vcmask 523264  }
  0x4e   : > { %s601_s30 = scalar_lea.vmem %s3270_s23, %s2253_s18  ;;  %v785_v36 = vunpack.c.0.s8 %v784_v31  ;;  %s2750_s23 = smov 24  }
  0x4f   : > { %v2538_v1 = vld [vmem:[%s3271_s2 + $0x8] sm:$0xff]   ;;  %v2539_v2 = vld [vmem:[%s3271_s2] sm:$0xff]   ;;  %2351 = vmatpush3.bf16.msra.mxu1 %v2543_v8  ;;  %v3010_v37 = vsub.s32 %v753_v32, %v755_v33 }
  0x50   : > { %2341 = vmatpush3.bf16.msra.mxu0 %v2538_v1  ;;  %v2966_v3 = vld [vmem:[%s601_s30] sm:$0xff]  ;;  %2364 = vmatprep.subr.bf16.mxu1 %v2741_v0  ;;  %v3012_v43 = vsub.s32 %v785_v36, %v755_v33 }
  0x51   : > { %2342 = vmatprep.subr.bf16.mxu0 %v2741_v0  ;;  %v608_v4 = vpack.c.bf16 %v2966_v3, %v2966_v3 }
  0x52   : > { %s3273_s18 = smov %s3272_s28  ;;  %v2540_v5 = vld [vmem:[%s3272_s28 + $0x8] sm:$0xff]   ;;  %s595_s28 = sand.u32 1, %s2718_s25  }
  0x53   : > { %v2541_v7 = vld [vmem:[%s3273_s18] sm:$0xff]   ;;  %2353 = vmatmul.mubr.msk.bf16.vlgmr.msra.gmra.mxu1 %vm632_vm1, %v608_v4  ;;  %s2128_s3 = scalar_lea.sflag [#allocation6], %s595_s28 }
  0x54   : > { %2343 = vmatpush3.bf16.msra.mxu0 %v2539_v2  ;;  %2366 = vmatprep.mubr.msk.bf16.mxu1 %vm2742_vm0, %v2741_v0 }
  0x55   : > { %2356 = vmatprep.subr.bf16.mxu0 %v2741_v0 }
  0x57   : > { %2345 = vmatmul.mubr.msk.bf16.vlgmr.msra.gmra.mxu0 %vm632_vm1, %v608_v4 }
  0x58   : > { %2357 = vmatpush3.bf16.msra.mxu0 %v2540_v5  ;;  %2360 = vmatprep.mubr.msk.bf16.mxu0 %vm2742_vm0, %v2741_v0 }
  0x59   : > { %2358 = vmatprep.subr.bf16.mxu0 %v2741_v0 }
  0x5c   : > { %2359 = vmatpush3.bf16.msra.mxu0 %v2541_v7 }
  0x5d   : > { %2370 = vmatprep.subr.bf16.mxu0 %v2741_v0 }
  0x5f   : > { %2361 = vmatmul.mubr.msk.bf16.vlgmr.msra.gmra.mxu0 %vm632_vm1, %v608_v4 }
  0x60   : > { %2372 = vmatprep.mubr.msk.bf16.mxu0 %vm2742_vm0, %v2741_v0 }
 0x113   : > { %v733_v22 = vpop.f32.mrf.mxu1 }
 0x114   : > { %v3005_v23 = vadd.f32 %v2258_v21, %v733_v22 }
 0x115   : > { %v2354_v24 = vpop.f32.mrf.mxu1 }
 0x117   : > { %v670_v10 = vpop.f32.mrf.mxu0  ;;  %v736_v25 = vpop.f32.mrf.mxu1 }
 0x118   : > { %v671_v11 = vadd.f32 %v2254_v9, %v670_v10 }
 0x119   : > { %v2346_v12 = vpop.f32.mrf.mxu0  ;;  %v2355_v26 = vpop.f32.mrf.mxu1 }
 0x11a   : > { %746 = vrot.lane.b32.xlu1 %v671_v11, %s2743_s0  ;;  %740 = vrot.lane.b32.xlu0 %v671_v11, %s2744_s26 }
 0x11b   : > { %v673_v13 = vpop.f32.mrf.mxu0 }
 0x11d   : > { %v2347_v14 = vpop.f32.mrf.mxu0 }
 0x11e   : > { %743 = vrot.lane.b32.xlu0 %v671_v11, %s2745_s21 }
 0x11f   : > { %v1111_v16 = vpop.f32.mrf.mxu0 }
 0x120   : > { %v2997_v17 = vadd.f32 %v2266_v15, %v1111_v16 }
 0x121   : > { %v2362_v18 = vpop.f32.mrf.mxu0 }
 0x122   : > { %1121 = vrot.lane.b32.xlu0 %v2997_v17, %s2745_s21  ;;  %1118 = vrot.lane.b32.xlu1 %v2997_v17, %s2744_s26 }
 0x123   : > { %v1114_v19 = vpop.f32.mrf.mxu0 }
 0x125   : > { %v2363_v20 = vpop.f32.mrf.mxu0 }
 0x126   : > { %1124 = vrot.lane.b32.xlu1 %v2997_v17, %s2743_s0  ;;  %895 = vrot.lane.b32.xlu0 %v3005_v23, %s2744_s26  ;;  %s2301_s26 = sshll.u32 %s2726_s27, 7 }
 0x127   : > { %s2140_s2 = scalar_lea.hbm %s3244_s17, %s2301_s26 }
 0x12a   : > { %898 = vrot.lane.b32.xlu1 %v3005_v23, %s2745_s21  ;;  %901 = vrot.lane.b32.xlu0 %v3005_v23, %s2743_s0 }
 0x18c   : > { %v747_v34 = vpop.permute.xlu1 %746  ;;  %v741_v35 = vpop.permute.xlu0 %740 }
 0x18d   : > { %v765_v38 = vcombine.low %v741_v35, %v747_v34  ;;  %v766_v39 = vcombine.high %v741_v35, %v747_v34 }
 0x18f   : > { %v773_v44 = vrot.slane %v765_v38, %v3010_v37  ;;  %v780_v45 = vrot.slane %v766_v39, %v3010_v37 }
 0x190   : > { %v744_v40 = vpop.permute.xlu0 %743 }
 0x191   : > { %v749_v41 = vcombine.low %v671_v11, %v744_v40  ;;  %v750_v42 = vcombine.high %v671_v11, %v744_v40 }
 0x193   : > { %v757_v46 = vrot.slane %v749_v41, %v3010_v37  ;;  %v764_v47 = vrot.slane %v750_v42, %v3010_v37 }
 0x194   : > { %v1119_v48 = vpop.permute.xlu1 %1118  ;;  %v1122_v53 = vpop.permute.xlu0 %1121 }
 0x195   : > { %v781_v49 = vcombine.low %v757_v46, %v773_v44  ;;  %v782_v50 = vcombine.high %v757_v46, %v773_v44  ;;  %v797_v51 = vcombine.low %v764_v47, %v780_v45  ;;  %v798_v52 = vcombine.high %v764_v47, %v780_v45 }
 0x196   : > { %v1127_v58 = vcombine.low %v2997_v17, %v1122_v53  ;;  %v1128_v59 = vcombine.high %v2997_v17, %v1122_v53 }
 0x197   : > { %v789_v54 = vrot.slane %v781_v49, %v3012_v43  ;;  %v796_v55 = vrot.slane %v782_v50, %v3012_v43  ;;  %v805_v56 = vrot.slane %v797_v51, %v3012_v43  ;;  %v812_v57 = vrot.slane %v798_v52, %v3012_v43 }
 0x198   : > { %v1125_v60 = vpop.permute.xlu1 %1124  ;;  %v1135_v9 = vrot.slane %v1127_v58, %v3010_v37  ;;  %v1142_v10 = vrot.slane %v1128_v59, %v3010_v37 }
 0x199   : > { %v817_v61 = vcombine.low %v789_v54, %v796_v55  ;;  %v2262_v62 = vcombine.high %v789_v54, %v796_v55  ;;  %v833_v63 = vcombine.low %v805_v56, %v812_v57  ;;  %v2263_v1 = vcombine.high %v805_v56, %v812_v57 }
 0x19a   : > { %v1143_v2 = vcombine.low %v1119_v48, %v1125_v60  ;;  %v1144_v4 = vcombine.high %v1119_v48, %v1125_v60 }
 0x19b   : > { %v824_v5 = vrot.slane %v817_v61, %v3010_v37  ;;  %v832_v6 = vrot.slane %v2262_v62, %v3010_v37  ;;  %v840_v7 = vrot.slane %v833_v63, %v3010_v37  ;;  %v848_v8 = vrot.slane %v2263_v1, %v3010_v37 }
 0x19c   : > { %v1151_v11 = vrot.slane %v1143_v2, %v3010_v37  ;;  %v1158_v12 = vrot.slane %v1144_v4, %v3010_v37 }
 0x19d   : > { %v849_v13 = vcombine.low %v824_v5, %v832_v6  ;;  %v850_v14 = vcombine.high %v824_v5, %v832_v6  ;;  %v865_v15 = vcombine.low %v840_v7, %v848_v8  ;;  %v866_v16 = vcombine.high %v840_v7, %v848_v8 }
 0x19e   : > { %v1159_v17 = vcombine.low %v1135_v9, %v1151_v11  ;;  %v1160_v18 = vcombine.high %v1135_v9, %v1151_v11  ;;  %v1175_v19 = vcombine.low %v1142_v10, %v1158_v12  ;;  %v1176_v20 = vcombine.high %v1142_v10, %v1158_v12  ;;  %v896_v10 = vpop.permute.xlu0 %895  ;;  %v899_v11 = vpop.permute.xlu1 %898 }
 0x19f   : > { %v857_v21 = vrot.slane %v849_v13, %v3012_v43  ;;  %v864_v22 = vrot.slane %v850_v14, %v3012_v43  ;;  %v873_v24 = vrot.slane %v865_v15, %v3012_v43  ;;  %v880_v25 = vrot.slane %v866_v16, %v3012_v43 }
 0x1a0   : > { %v1167_v26 = vrot.slane %v1159_v17, %v3012_v43  ;;  %v1174_v27 = vrot.slane %v1160_v18, %v3012_v43  ;;  %v1183_v28 = vrot.slane %v1175_v19, %v3012_v43  ;;  %v1190_v29 = vrot.slane %v1176_v20, %v3012_v43 }
 0x1a1   : > { %v881_v30 = vcombine.low %v857_v21, %v873_v24  ;;  %v882_v31 = vcombine.high %v857_v21, %v873_v24  ;;  %v883_v32 = vcombine.low %v864_v22, %v880_v25  ;;  %v884_v33 = vcombine.high %v864_v22, %v880_v25 }
 0x1a2   : > { %v1195_v34 = vcombine.low %v1167_v26, %v1174_v27  ;;  %v2270_v35 = vcombine.high %v1167_v26, %v1174_v27  ;;  %v1211_v36 = vcombine.low %v1183_v28, %v1190_v29  ;;  %v2271_v38 = vcombine.high %v1183_v28, %v1190_v29  ;;  %v902_v14 = vpop.permute.xlu0 %901 }
 0x1a3   : > { %v885_v39 = vpack.c.bf16 %v881_v30, %v881_v30  ;;  %v886_v40 = vpack.c.bf16 %v882_v31, %v882_v31  ;;  %v887_v41 = vpack.c.bf16 %v883_v32, %v883_v32  ;;  %v888_v42 = vpack.c.bf16 %v884_v33, %v884_v33 }
 0x1a4   : > { %v1202_v44 = vrot.slane %v1195_v34, %v3010_v37  ;;  %v1210_v45 = vrot.slane %v2270_v35, %v3010_v37  ;;  %v1218_v46 = vrot.slane %v1211_v36, %v3010_v37  ;;  %v1226_v47 = vrot.slane %v2271_v38, %v3010_v37 }
 0x1a5   : > { %890 = vst.msk [vmem:[#allocation2] sm:$0xf] %vm889_vm2, %v885_v39  ;;  %891 = vst.msk [vmem:[#allocation2 + $0x4] sm:$0xf] %vm889_vm2, %v886_v40  ;;  %v904_v12 = vcombine.low %v3005_v23, %v899_v11  ;;  %v905_v13 = vcombine.high %v3005_v23, %v899_v11  ;;  %v920_v15 = vcombine.low %v896_v10, %v902_v14 }
 0x1a6   : > { %892 = vst.msk [vmem:[#allocation2 + $0x8] sm:$0xf] %vm889_vm2, %v887_v41  ;;  %893 = vst.msk [vmem:[#allocation2 + $0xc] sm:$0xf] %vm889_vm2, %v888_v42  ;;  %v1227_v48 = vcombine.low %v1202_v44, %v1210_v45  ;;  %v1243_v49 = vcombine.low %v1218_v46, %v1226_v47  ;;  %v1228_v56 = vcombine.high %v1202_v44, %v1210_v45 }
 0x1a7   : > { %v1244_v57 = vcombine.high %v1218_v46, %v1226_v47  ;;  %v921_v16 = vcombine.high %v896_v10, %v902_v14  ;;  %v912_v17 = vrot.slane %v904_v12, %v3010_v37  ;;  %v919_v18 = vrot.slane %v905_v13, %v3010_v37 }
 0x1a8   : > { %v1235_v50 = vrot.slane %v1227_v48, %v3012_v43  ;;  %v1251_v51 = vrot.slane %v1243_v49, %v3012_v43  ;;  %v1242_v1 = vrot.slane %v1228_v56, %v3012_v43  ;;  %v928_v19 = vrot.slane %v920_v15, %v3010_v37 }
 0x1a9   : > { %v1258_v2 = vrot.slane %v1244_v57, %v3012_v43  ;;  %v935_v20 = vrot.slane %v921_v16, %v3010_v37 }
 0x1aa   : > { %v1259_v58 = vcombine.low %v1235_v50, %v1251_v51  ;;  %v1260_v59 = vcombine.high %v1235_v50, %v1251_v51  ;;  %v936_v21 = vcombine.low %v912_v17, %v928_v19  ;;  %v937_v22 = vcombine.high %v912_v17, %v928_v19 }
 0x1ab   : > { %v1261_v6 = vcombine.low %v1242_v1, %v1258_v2  ;;  %v1262_v7 = vcombine.high %v1242_v1, %v1258_v2  ;;  %v952_v24 = vcombine.low %v919_v18, %v935_v20  ;;  %v953_v25 = vcombine.high %v919_v18, %v935_v20 }
 0x1ac   : > { %v1267_v52 = vld [vmem:[#allocation2] sm:$0xf]  ;;  %v1268_v53 = vld [vmem:[#allocation2 + $0x4] sm:$0xf]  ;;  %v1263_v62 = vpack.c.bf16 %v1259_v58, %v1259_v58  ;;  %v1264_v63 = vpack.c.bf16 %v1260_v59, %v1260_v59  ;;  %v944_v26 = vrot.slane %v936_v21, %v3012_v43  ;;  %v951_v27 = vrot.slane %v937_v22, %v3012_v43 }
 0x1ad   : > { %v1276_v54 = vsel %vm1271_vm3, %v1267_v52, 0  ;;  %v1322_v55 = vsel %vm1271_vm3, %v1268_v53, 0  ;;  %v1269_v60 = vld [vmem:[#allocation2 + $0x8] sm:$0xf]  ;;  %v1270_v61 = vld [vmem:[#allocation2 + $0xc] sm:$0xf]  ;;  %v1265_v8 = vpack.c.bf16 %v1261_v6, %v1261_v6  ;;  %v1266_v9 = vpack.c.bf16 %v1262_v7, %v1262_v7 }
 0x1ae   : > { %2365 = vmatpush3.bf16.xpose.msra.mxu1 %v1276_v54  ;;  %2371 = vmatpush3.bf16.xpose.msra.mxu0 %v1322_v55  ;;  %v1368_v4 = vsel %vm1271_vm3, %v1269_v60, 0  ;;  %v1414_v5 = vsel %vm1271_vm3, %v1270_v61, 0  ;;  %v960_v23 = vrot.slane %v952_v24, %v3012_v43  ;;  %v967_v28 = vrot.slane %v953_v25, %v3012_v43 }
 0x1af   : > { %2376 = vmatprep.subr.bf16.mxu1 %v2741_v0  ;;  %2382 = vmatprep.subr.bf16.mxu0 %v2741_v0  ;;  %v972_v29 = vcombine.low %v944_v26, %v951_v27  ;;  %v2264_v30 = vcombine.high %v944_v26, %v951_v27 }
 0x1b0   : > { %v988_v31 = vcombine.low %v960_v23, %v967_v28  ;;  %v2265_v32 = vcombine.high %v960_v23, %v967_v28 }
 0x1b1   : > { %v979_v33 = vrot.slane %v972_v29, %v3010_v37  ;;  %v987_v34 = vrot.slane %v2264_v30, %v3010_v37 }
 0x1b2   : > { %v995_v35 = vrot.slane %v988_v31, %v3010_v37  ;;  %v1003_v36 = vrot.slane %v2265_v32, %v3010_v37 }
 0x1b3   : > { %v1004_v38 = vcombine.low %v979_v33, %v987_v34  ;;  %v1005_v39 = vcombine.high %v979_v33, %v987_v34 }
 0x1b4   : > { %v1020_v40 = vcombine.low %v995_v35, %v1003_v36  ;;  %v1021_v41 = vcombine.high %v995_v35, %v1003_v36 }
 0x1b5   : > { %2367 = vmatmul.mubr.msk.bf16.vlgmr.msra.gmra.mxu1 %vm1271_vm3, %v1263_v62  ;;  %2373 = vmatmul.mubr.msk.bf16.vlgmr.msra.gmra.mxu0 %vm1271_vm3, %v1264_v63  ;;  %v1012_v42 = vrot.slane %v1004_v38, %v3012_v43  ;;  %v1019_v44 = vrot.slane %v1005_v39, %v3012_v43 }
 0x1b6   : > { %2377 = vmatpush3.bf16.xpose.msra.mxu1 %v1368_v4  ;;  %2383 = vmatpush3.bf16.xpose.msra.mxu0 %v1414_v5  ;;  %v1028_v45 = vrot.slane %v1020_v40, %v3012_v43  ;;  %v1035_v46 = vrot.slane %v1021_v41, %v3012_v43 }
 0x1b7   : > { %2378 = vmatprep.mubr.msk.bf16.mxu1 %vm2742_vm0, %v2741_v0  ;;  %2384 = vmatprep.mubr.msk.bf16.mxu0 %vm2742_vm0, %v2741_v0 }
 0x1b8   : > { %2388 = vmatprep.subr.bf16.mxu1 %v2741_v0  ;;  %2394 = vmatprep.subr.bf16.mxu0 %v2741_v0  ;;  %v1036_v47 = vcombine.low %v1012_v42, %v1028_v45  ;;  %v1037_v48 = vcombine.high %v1012_v42, %v1028_v45  ;;  %v1038_v49 = vcombine.low %v1019_v44, %v1035_v46 }
 0x1b9   : > { %v1039_v50 = vcombine.high %v1019_v44, %v1035_v46 }
 0x1ba   : > { %v1040_v51 = vpack.c.bf16 %v1036_v47, %v1036_v47  ;;  %v1041_v52 = vpack.c.bf16 %v1037_v48, %v1037_v48  ;;  %v1042_v53 = vpack.c.bf16 %v1038_v49, %v1038_v49 }
 0x1bb   : > { %v1043_v54 = vpack.c.bf16 %v1039_v50, %v1039_v50 }
 0x1bc   : > { %1044 = vst.msk [vmem:[#allocation3] sm:$0xf] %vm889_vm2, %v1040_v51  ;;  %1045 = vst.msk [vmem:[#allocation3 + $0x4] sm:$0xf] %vm889_vm2, %v1041_v52 }
 0x1bd   : > { %2379 = vmatmul.mubr.msk.bf16.vlgmr.msra.gmra.mxu1 %vm1271_vm3, %v1265_v8  ;;  %2385 = vmatmul.mubr.msk.bf16.vlgmr.msra.gmra.mxu0 %vm1271_vm3, %v1266_v9  ;;  %1046 = vst.msk [vmem:[#allocation3 + $0x8] sm:$0xf] %vm889_vm2, %v1042_v53  ;;  %1047 = vst.msk [vmem:[#allocation3 + $0xc] sm:$0xf] %vm889_vm2, %v1043_v54 }
 0x1be   : > { %2390 = vmatprep.mubr.msk.bf16.mxu1 %vm2742_vm0, %v2741_v0  ;;  %2396 = vmatprep.mubr.msk.bf16.mxu0 %vm2742_vm0, %v2741_v0 }
 0x1c3   : > { %v1492_v55 = vld [vmem:[#allocation3] sm:$0xf]  ;;  %v1493_v56 = vld [vmem:[#allocation3 + $0x4] sm:$0xf] }
 0x1c4   : > { %v1505_v57 = vsel %vm1503_vm4, %v1492_v55, 0  ;;  %v1551_v58 = vsel %vm1503_vm4, %v1493_v56, 0  ;;  %v1494_v30 = vld [vmem:[#allocation3 + $0x8] sm:$0xf]  ;;  %v1495_v34 = vld [vmem:[#allocation3 + $0xc] sm:$0xf] }
 0x1c5   : > { %2389 = vmatpush3.bf16.msra.mxu1 %v1505_v57  ;;  %2395 = vmatpush3.bf16.msra.mxu0 %v1551_v58  ;;  %v1597_v38 = vsel %vm1503_vm4, %v1494_v30, 0  ;;  %v1643_v39 = vsel %vm1503_vm4, %v1495_v34, 0  ;;  %v2545_v34 = vld [vmem:[#allocation7] sm:$0xff]  }
 0x1c6   : > { %2400 = vmatprep.subr.bf16.mxu1 %v2741_v0  ;;  %2406 = vmatprep.subr.bf16.mxu0 %v2741_v0 }
 0x275   : > { %v1312_v59 = vpop.f32.mrf.mxu1  ;;  %v1358_v60 = vpop.f32.mrf.mxu0 }
 0x276   : > { %v1456_v61 = vsel %vm1271_vm3, %v1312_v59, -inf  ;;  %v1459_v62 = vsel %vm1271_vm3, %v1358_v60, -inf }
 0x277   : > { %1457 = vmax.xlane.f32.xlu1 %v1456_v61  ;;  %v2368_v63 = vpop.f32.mrf.mxu1  ;;  %1460 = vmax.xlane.f32.xlu0 %v1459_v62  ;;  %v2374_v1 = vpop.f32.mrf.mxu0 }
 0x279   : > { %v1315_v2 = vpop.f32.mrf.mxu1  ;;  %v1361_v4 = vpop.f32.mrf.mxu0 }
 0x27b   : > { %v2369_v5 = vpop.f32.mrf.mxu1  ;;  %v2375_v6 = vpop.f32.mrf.mxu0 }
 0x27d   : > { %v1404_v7 = vpop.f32.mrf.mxu1  ;;  %v1450_v8 = vpop.f32.mrf.mxu0 }
 0x27e   : > { %v1462_v9 = vsel %vm1271_vm3, %v1404_v7, -inf  ;;  %v1465_v10 = vsel %vm1271_vm3, %v1450_v8, -inf }
 0x27f   : > { %v2380_v11 = vpop.f32.mrf.mxu1  ;;  %1463 = vmax.xlane.f32.xlu0 %v1462_v9  ;;  %1466 = vmax.xlane.f32.xlu1 %v1465_v10  ;;  %v2386_v12 = vpop.f32.mrf.mxu0 }
 0x281   : > { %v1407_v13 = vpop.f32.mrf.mxu1  ;;  %v1453_v14 = vpop.f32.mrf.mxu0 }
 0x283   : > { %v2381_v15 = vpop.f32.mrf.mxu1  ;;  %v2387_v16 = vpop.f32.mrf.mxu0 }
 0x300   : > { %v1458_v17 = vpop.xlane.xlu1 %1457  ;;  %v1461_v18 = vpop.xlane.xlu0 %1460 }
 0x301   : > { %v1468_v19 = vsub.f32 %v1312_v59, %v1458_v17  ;;  %v1469_v20 = vsub.f32 %v1358_v60, %v1461_v18 }
 0x303   : > { %v1472_v21 = vmul.f32 1.442695, %v1468_v19  ;;  %v1474_v22 = vmul.f32 1.442695, %v1469_v20 }
 0x305   : > { %2552 = vpow2.f32 %v1472_v21 }
 0x306   : > { %2554 = vpow2.f32 %v1474_v22 }
 0x308   : > { %v1464_v24 = vpop.xlane.xlu0 %1463  ;;  %v1467_v25 = vpop.xlane.xlu1 %1466 }
 0x309   : > { %v1470_v26 = vsub.f32 %v1404_v7, %v1464_v24  ;;  %v1471_v27 = vsub.f32 %v1450_v8, %v1467_v25 }
 0x30b   : > { %v1476_v23 = vmul.f32 1.442695, %v1470_v26  ;;  %v1478_v28 = vmul.f32 1.442695, %v1471_v27  ;;  %v2544_v26 = vld [vmem:[#allocation7 + $0x8] sm:$0xff]  }
 0x30d   : > { %2556 = vpow2.f32 %v1476_v23 }
 0x30e   : > { %2558 = vpow2.f32 %v1478_v28 }
 0x312   : > { %v2553_v29 = vpop.eup %2552 }
 0x313   : > { %v2555_v31 = vpop.eup %2554  ;;  %v1480_v32 = vsel %vm1271_vm3, %v2553_v29, 0.0  ;;  %v1496_v33 = vpack.c.bf16 %v2553_v29, %v2553_v29 }
 0x314   : > { %1481 = vadd.xlane.f32.xlu0 %v1480_v32  ;;  %v1483_v35 = vsel %vm1271_vm3, %v2555_v31, 0.0  ;;  %v1497_v36 = vpack.c.bf16 %v2555_v31, %v2555_v31 }
 0x315   : > { %1484 = vadd.xlane.f32.xlu1 %v1483_v35  ;;  %2391 = vmatmul.mubr.msk.bf16.vlgmr.msra.gmra.mxu1 %vm1271_vm3, %v1496_v33 }
 0x316   : > { %2397 = vmatmul.mubr.msk.bf16.vlgmr.msra.gmra.mxu0 %vm1271_vm3, %v1497_v36  ;;  %2401 = vmatpush3.bf16.msra.mxu1 %v1597_v38 }
 0x317   : > { %2407 = vmatpush3.bf16.msra.mxu0 %v1643_v39  ;;  %2402 = vmatprep.mubr.msk.bf16.mxu1 %vm2742_vm0, %v2741_v0 }
 0x318   : > { %2408 = vmatprep.mubr.msk.bf16.mxu0 %vm2742_vm0, %v2741_v0  ;;  %2412 = vmatprep.subr.bf16.mxu1 %v2741_v0 }
 0x319   : > { %2420 = vmatprep.subr.bf16.mxu0 %v2741_v0 }
 0x31a   : > { %v2557_v40 = vpop.eup %2556 }
 0x31b   : > { %v2559_v41 = vpop.eup %2558  ;;  %v1486_v42 = vsel %vm1271_vm3, %v2557_v40, 0.0  ;;  %v1498_v44 = vpack.c.bf16 %v2557_v40, %v2557_v40 }
 0x31c   : > { %1487 = vadd.xlane.f32.xlu0 %v1486_v42  ;;  %v1489_v45 = vsel %vm1271_vm3, %v2559_v41, 0.0  ;;  %v1499_v46 = vpack.c.bf16 %v2559_v41, %v2559_v41 }
 0x31d   : > { %1490 = vadd.xlane.f32.xlu1 %v1489_v45  ;;  %2403 = vmatmul.mubr.msk.bf16.vlgmr.msra.gmra.mxu1 %vm1271_vm3, %v1498_v44 }
 0x31e   : > { %2409 = vmatmul.mubr.msk.bf16.vlgmr.msra.gmra.mxu0 %vm1271_vm3, %v1499_v46  ;;  %2416 = vmatprep.mubr.msk.bf16.mxu1 %vm2742_vm0, %v2741_v0 }
 0x31f   : > { %2424 = vmatprep.mubr.msk.bf16.mxu0 %vm2742_vm0, %v2741_v0  ;;  %2413 = vmatpush3.bf16.msra.mxu1 %v2544_v26 }
 0x320   : > { %2414 = vmatprep.subr.bf16.mxu1 %v2741_v0 }
 0x323   : > { %2415 = vmatpush3.bf16.msra.mxu1 %v2545_v34 }
 0x324   : > { %2428 = vmatprep.subr.bf16.mxu1 %v2741_v0 }
 0x39d   : > { %v1482_v47 = vpop.xlane.xlu0 %1481 }
 0x39e   : > { %v1485_v48 = vpop.xlane.xlu1 %1484  ;;  %2560 = vrcp.f32 %v1482_v47 }
 0x39f   : > { %2562 = vrcp.f32 %v1485_v48 }
 0x3a5   : > { %v1488_v49 = vpop.xlane.xlu0 %1487 }
 0x3a6   : > { %v1491_v50 = vpop.xlane.xlu1 %1490  ;;  %2564 = vrcp.f32 %v1488_v49 }
 0x3a7   : > { %2566 = vrcp.f32 %v1491_v50 }
 0x3ab   : > { %v2561_v57 = vpop.eup %2560 }
 0x3ac   : > { %v2563_v59 = vpop.eup %2562 }
 0x3b3   : > { %v2565_v61 = vpop.eup %2564 }
 0x3b4   : > { %v2567_v63 = vpop.eup %2566 }
 0x3d5   : > { %v1541_v51 = vpop.f32.mrf.mxu1 }
 0x3d6   : > { %v1587_v52 = vpop.f32.mrf.mxu0  ;;  %v1689_v1 = vmul.f32 %v2561_v57, %v1541_v51 }
 0x3d7   : > { %v2392_v53 = vpop.f32.mrf.mxu1  ;;  %v1690_v5 = vmul.f32 %v2563_v59, %v1587_v52 }
 0x3d8   : > { %v2398_v54 = vpop.f32.mrf.mxu0 }
 0x3d9   : > { %v1544_v55 = vpop.f32.mrf.mxu1 }
 0x3da   : > { %v1590_v56 = vpop.f32.mrf.mxu0 }
 0x3db   : > { %v2393_v58 = vpop.f32.mrf.mxu1 }
 0x3dc   : > { %v2399_v60 = vpop.f32.mrf.mxu0  ;;  %v2282_v58 = vld [vmem:[%s3235_s8] ss:$0 sm:$0xff] }
 0x3dd   : > { %v1633_v62 = vpop.f32.mrf.mxu1 }
 0x3de   : > { %v1691_v2 = vmul.f32 %v2565_v61, %v1633_v62  ;;  %v1679_v4 = vpop.f32.mrf.mxu0 }
 0x3df   : > { %v1692_v6 = vmul.f32 %v2567_v63, %v1679_v4  ;;  %v2404_v7 = vpop.f32.mrf.mxu1 }
 0x3e0   : > { %v1693_v8 = vcombine.low %v1689_v1, %v1691_v2  ;;  %v1694_v9 = vcombine.high %v1689_v1, %v1691_v2  ;;  %v2410_v10 = vpop.f32.mrf.mxu0 }
 0x3e1   : > { %v1709_v11 = vcombine.low %v1690_v5, %v1692_v6  ;;  %v1710_v12 = vcombine.high %v1690_v5, %v1692_v6  ;;  %v1636_v13 = vpop.f32.mrf.mxu1  ;;  %v2547_v10 = vld [vmem:[#allocation9] sm:$0xff]  }
 0x3e2   : > { %v1701_v14 = vrot.slane %v1693_v8, %v3010_v37  ;;  %v1708_v15 = vrot.slane %v1694_v9, %v3010_v37  ;;  %v1682_v16 = vpop.f32.mrf.mxu0  ;;  %v2546_v9 = vld [vmem:[#allocation9 + $0x8] sm:$0xff]  }
 0x3e3   : > { %v1717_v17 = vrot.slane %v1709_v11, %v3010_v37  ;;  %v1724_v18 = vrot.slane %v1710_v12, %v3010_v37  ;;  %v2405_v19 = vpop.f32.mrf.mxu1  ;;  %2421 = vmatpush3.bf16.msra.mxu0 %v2546_v9  ;;  %v2549_v11 = vld [vmem:[%s3240_s13 + $0x10] sm:$0xff]   ;;  %v2286_v16 = vld [vmem:[%s3236_s9] ss:$0 sm:$0xff] }
 0x3e4   : > { %v2411_v20 = vpop.f32.mrf.mxu0  ;;  %2422 = vmatprep.subr.bf16.mxu0 %v2741_v0 }
 0x3e5   : > { %v1725_v21 = vcombine.low %v1701_v14, %v1717_v17  ;;  %v1726_v22 = vcombine.high %v1701_v14, %v1717_v17  ;;  %v1741_v24 = vcombine.low %v1708_v15, %v1724_v18  ;;  %v1742_v25 = vcombine.high %v1708_v15, %v1724_v18  ;;  %v2287_v18 = vld [vmem:[%s3237_s10] ss:$0 sm:$0xff] }
 0x3e7   : > { %v1733_v27 = vrot.slane %v1725_v21, %v3012_v43  ;;  %v1740_v23 = vrot.slane %v1726_v22, %v3012_v43  ;;  %v1749_v28 = vrot.slane %v1741_v24, %v3012_v43  ;;  %v1756_v29 = vrot.slane %v1742_v25, %v3012_v43  ;;  %2423 = vmatpush3.bf16.msra.mxu0 %v2547_v10  ;;  %v2550_v22 = vld [vmem:[%s3240_s13 + $0x8] sm:$0xff]   ;;  %v2551_v24 = vld [vmem:[%s3240_s13] sm:$0xff]  }
 0x3e8   : > { %v2288_v25 = vld [vmem:[%s3239_s12] ss:$0 sm:$0xff] }
 0x3e9   : > { %v1761_v30 = vcombine.low %v1733_v27, %v1740_v23  ;;  %v2280_v31 = vcombine.high %v1733_v27, %v1740_v23  ;;  %v1777_v32 = vcombine.low %v1749_v28, %v1756_v29  ;;  %v2281_v33 = vcombine.high %v1749_v28, %v1756_v29 }
 0x3eb   : > { %v1768_v35 = vrot.slane %v1761_v30, %v3010_v37  ;;  %v1776_v36 = vrot.slane %v2280_v31, %v3010_v37  ;;  %v1784_v38 = vrot.slane %v1777_v32, %v3010_v37  ;;  %v1792_v39 = vrot.slane %v2281_v33, %v3010_v37 }
 0x3ed   : > { %v1794_v40 = vcombine.high %v1768_v35, %v1776_v36  ;;  %v1810_v41 = vcombine.high %v1784_v38, %v1792_v39  ;;  %v1793_v42 = vcombine.low %v1768_v35, %v1776_v36  ;;  %v1809_v44 = vcombine.low %v1784_v38, %v1792_v39 }
 0x3ef   : > { %v1808_v45 = vrot.slane %v1794_v40, %v3012_v43  ;;  %v1824_v46 = vrot.slane %v1810_v41, %v3012_v43  ;;  %v1801_v47 = vrot.slane %v1793_v42, %v3012_v43  ;;  %v1817_v48 = vrot.slane %v1809_v44, %v3012_v43 }
 0x3f1   : > { %v1827_v49 = vcombine.low %v1808_v45, %v1824_v46  ;;  %v1826_v50 = vcombine.high %v1801_v47, %v1817_v48  ;;  %v1825_v51 = vcombine.low %v1801_v47, %v1817_v48  ;;  %v1828_v37 = vcombine.high %v1808_v45, %v1824_v46 }
 0x3f3   : > { %1834 = vrot.lane.b32.xlu1 %v1827_v49, %s2748_s22  ;;  %1830 = vrot.lane.b32.xlu0 %v1826_v50, %s2749_s24  ;;  %s2252_s22 = sshll.u32 %s595_s28, 3  ;;  %v2298_v50 = vld [vmem:[%s3242_s15] ss:$0 sm:$0xff] }
 0x3f4   : > { %s597_s20 = scalar_lea.vmem [#allocation10], %s2252_s22 }
 0x3f5   : > { %s2142_s19 = sshll.u32 %s597_s20, 4  ;;  %s2143_s19 = int_to_ptr.vmem [resolvable:$true] %s2142_s19 }
 0x3f6   : > { %s2650_s24 = scalar_lea.vmem %s2143_s19, 128 }
 0x3f7   : > { %1838 = vrot.lane.b32.xlu1 %v1828_v37, %s2750_s23  ;;  %v2299_v37 = vld [vmem:[%s3243_s16] ss:$0 sm:$0xff]  ;;  %p2651_p10 = scmp.ne.s32.totalorder %s2143_s19, %s2650_s24  ;;  %s2751_s23 = smov [#allocation10]  }
 0x3f8   : > { %s2654_s30 = sshll.u32 %s2751_s23, 4  ;;  %s2655_s30 = int_to_ptr.vmem [resolvable:$false] %s2654_s30 }
 0x3f9   : > { %p2652_p11 = pnand %p2651_p10, %p2882_p4  ;;  %s2656_s27 = scalar_lea.vmem %s2655_s30, 256 }
 0x3fa   : > { %p2657_p3 = scmp.lt.s32.totalorder %s2143_s19, %s2655_s30  ;;  %p2658_p6 = scmp.lt.s32.totalorder %s2656_s27, %s2650_s24 }
 0x3fb   : > { %p2653_p13 = pneg %p2652_p11 }
 0x3fc   : > { %p2659_p7 = por %p2658_p6, %p2657_p3 }
 0x3fe   : > { %p2660_p9 = pnand %p2659_p7, %p2653_p13 }
 0x465   : > { %v1835_v52 = vpop.permute.xlu1 %1834  ;;  %v1831_v53 = vpop.permute.xlu0 %1830 }
 0x466   : > { %v1841_v54 = vsel %vm1271_vm3, %v1825_v51, %v1831_v53 }
 0x467   : > { %v1843_v56 = vsel %vm1842_vm5, %v1841_v54, %v1835_v52 }
 0x469   : > { %v1839_v55 = vpop.permute.xlu1 %1838 }
 0x46a   : > { %v1845_v57 = vsel %vm1844_vm6, %v1843_v56, %v1839_v55 }
 0x46b   : > { %v1846_v43 = vpack.c.bf16 %v1845_v57, %v1845_v57 }
 0x46d   : > { %2417 = vmatmul.mubr.msk.bf16.vlgmr.msra.gmra.mxu1 %vm632_vm1, %v1846_v43 }
 0x46e   : > { %2436 = vmatprep.mubr.msk.bf16.mxu1 %vm2742_vm0, %v2741_v0 }
 0x52d   : > { %v1907_v59 = vpop.f32.mrf.mxu1 }
 0x52e   : > { %v1908_v60 = vadd.f32 %v2282_v58, %v1907_v59 }
 0x52f   : > { %v2418_v61 = vpop.f32.mrf.mxu1 }
 0x530   : > { %v1913_v62 = vadd.f32 %v1908_v60, %v2966_v3  ;;  %v2548_v3 = vld [vmem:[%s3240_s13 + $0x18] sm:$0xff]  }
 0x531   : > { %v1910_v63 = vpop.f32.mrf.mxu1  ;;  %2429 = vmatpush3.bf16.msra.mxu1 %v2548_v3 }
 0x532   : > { %v1916_v1 = vsel %vm632_vm1, %v1913_v62, 0.0  ;;  %2430 = vmatprep.subr.bf16.mxu1 %v2741_v0 }
 0x533   : > { %1917 = vadd.xlane.f32.xlu0 %v1916_v1  ;;  %v2419_v2 = vpop.f32.mrf.mxu1 }
 0x535   : > { %2431 = vmatpush3.bf16.msra.mxu1 %v2549_v11 }
 0x536   : > { %2432 = vmatprep.subr.bf16.mxu1 %v2741_v0 }
 0x539   : > { %2433 = vmatpush3.bf16.msra.mxu1 %v2550_v22 }
 0x53a   : > { %2434 = vmatprep.subr.bf16.mxu1 %v2741_v0  ;;  %v2292_v0 = vld [vmem:[%s3241_s14] ss:$0 sm:$0xff] }
 0x53d   : > { %2435 = vmatpush3.bf16.msra.mxu1 %v2551_v24 }
 0x5bc   : > { %v1918_v4 = vpop.xlane.xlu0 %1917 }
 0x5bd   : > { %v1920_v5 = vmul.f32 0.03125, %v1918_v4 }
 0x5bf   : > { %v1921_v6 = vsub.f32 %v1913_v62, %v1920_v5 }
 0x5c1   : > { %v1922_v7 = vmul.f32 %v1921_v6, %v1921_v6 }
 0x5c3   : > { %v1923_v8 = vsel %vm632_vm1, %v1922_v7, 0.0 }
 0x5c4   : > { %1924 = vadd.xlane.f32.xlu1 %v1923_v8 }
 0x64d   : > { %v1925_v12 = vpop.xlane.xlu1 %1924 }
 0x64e   : > { %v1926_v13 = vmul.f32 0.03125, %v1925_v12 }
 0x650   : > { %v1927_v14 = vadd.f32 1e-05, %v1926_v13 }
 0x652   : > { %2568 = vrsqrt.f32 %v1927_v14 }
 0x65f   : > { %v2569_v15 = vpop.eup %2568 }
 0x660   : > { %v1929_v17 = vmul.f32 %v2569_v15, %v1921_v6 }
 0x662   : > { %v1936_v19 = vmul.f32 %v2286_v16, %v1929_v17 }
 0x664   : > { %v1943_v20 = vadd.f32 %v2287_v18, %v1936_v19 }
 0x666   : > { %v1944_v21 = vpack.c.bf16 %v1943_v20, %v1943_v20 }
 0x668   : > { %2425 = vmatmul.mubr.msk.bf16.vlgmr.msra.gmra.mxu0 %vm632_vm1, %v1944_v21 }
 0x728   : > { %v2005_v26 = vpop.f32.mrf.mxu0 }
 0x729   : > { %v2006_v27 = vadd.f32 %v2288_v25, %v2005_v26 }
 0x72a   : > { %v2426_v23 = vpop.f32.mrf.mxu0 }
 0x72b   : > { %v2011_v28 = vmax.f32 %v2006_v27, 0.0 }
 0x72c   : > { %v2008_v29 = vpop.f32.mrf.mxu0 }
 0x72d   : > { %v2012_v30 = vpack.c.bf16 %v2011_v28, %v2011_v28 }
 0x72e   : > { %v2427_v31 = vpop.f32.mrf.mxu0 }
 0x72f   : > { %2437 = vmatmul.mubr.msk.bf16.vlgmr.msra.gmra.mxu1 %vm2052_vm7, %v2012_v30 }
 0x7ef   : > { %v2090_v32 = vpop.f32.mrf.mxu1 }
 0x7f0   : > { %v2091_v33 = vadd.f32 %v2292_v0, %v2090_v32 }
 0x7f1   : > { %v2438_v34 = vpop.f32.mrf.mxu1 }
 0x7f2   : > { %v2096_v35 = vadd.f32 %v2091_v33, %v1943_v20 }
 0x7f3   : > { %v2093_v36 = vpop.f32.mrf.mxu1 }
 0x7f4   : > { %v2099_v38 = vsel %vm632_vm1, %v2096_v35, 0.0 }
 0x7f5   : > { %2100 = vadd.xlane.f32.xlu0 %v2099_v38  ;;  %v2439_v39 = vpop.f32.mrf.mxu1 }
 0x87e   : > { %v2101_v40 = vpop.xlane.xlu0 %2100 }
 0x87f   : > { %v2102_v41 = vmul.f32 0.03125, %v2101_v40 }
 0x881   : > { %v2103_v42 = vsub.f32 %v2096_v35, %v2102_v41 }
 0x883   : > { %v2104_v44 = vmul.f32 %v2103_v42, %v2103_v42 }
 0x885   : > { %v2105_v45 = vsel %vm632_vm1, %v2104_v44, 0.0 }
 0x886   : > { %2106 = vadd.xlane.f32.xlu0 %v2105_v45 }
 0x90f   : > { %v2107_v46 = vpop.xlane.xlu0 %2106 }
 0x910   : > { %v2108_v47 = vmul.f32 0.03125, %v2107_v46 }
 0x912   : > { %v2109_v48 = vadd.f32 1e-05, %v2108_v47 }
 0x914   : > { %2570 = vrsqrt.f32 %v2109_v48 }
 0x921   : > { %v2571_v49 = vpop.eup %2570 }
 0x922   : > { %v2111_v51 = vmul.f32 %v2571_v49, %v2103_v42 }
 0x924   : > { %v2118_v52 = vmul.f32 %v2298_v50, %v2111_v51 }
 0x926   : > { %v2125_v53 = vadd.f32 %v2299_v37, %v2118_v52 }
 0x928   : > { %2126 = vst.msk [vmem:[%s597_s20] sm:$0xff] %vm632_vm1, %v2125_v53 }
 0x929   : > { %2663 = shalt.err (!%p2660_p9)
}
 0x92a   : > { %s2664_s22 = scalar_lea.hbm %s2140_s2, 128  ;;  %s2668_s26 = scalar_lea.hbm %s3244_s17, 256 }
 0x92b   : > { %p2665_p12 = scmp.ne.s32.totalorder %s2140_s2, %s2664_s22  ;;  %p2669_p2 = scmp.lt.s32.totalorder %s2140_s2, %s3244_s17 }
 0x92c   : > { %p2670_p5 = scmp.lt.s32.totalorder %s2668_s26, %s2664_s22 }
 0x92d   : > { %p2666_p1 = pnand %p2665_p12, %p2882_p4 }
 0x92e   : > { %p2671_p0 = por %p2670_p5, %p2669_p2 }
 0x92f   : > { %p2667_p8 = pneg %p2666_p1 }
 0x931   : > { %p2672_p10 = pnand %p2671_p0, %p2667_p8 }
 0x933   : > { %2675 = shalt.err (!%p2672_p10)
}
 0x934   : > { %2452 = dma.vmem_to_hbm [thread:$0]  (%p2882_p4), %s2143_s19, 128, %s2140_s2, %s2128_s3  }
 0x935 PF: > { %s3274_s29 = sld [smem:[#allocation17_spill]] }
 0x936   : > { %s3275_s24 = sld [smem:[#allocation14_spill]] }
 0x937   : > { %s3276_s23 = sld [smem:[#allocation19_spill]] }
 0x93b   : > { %p2474_p11 = scmp.ge.s32.totalorder %s3274_s29, 2 }
 0x93c   : > { %s2154_s30 = sand.u32 1, %s3275_s24  }
 0x93d   : > { %p3277_p13 = scmp.ne.s32.totalorder %s3276_s23, 0  ;;  %s2155_s27 = scalar_lea.sflag [#allocation6], %s2154_s30 }
 0x93f   : > { %p2465_p3 = pnand %p2474_p11, %p3277_p13 }
 0x941   : > { %p2466_p6 = pneg %p2465_p3 }
 0x943   : > { %2709 = dma.done.wait (%p2466_p6), %s2155_s27, 128  }
 0x944   : > { %2711 = vsyncadd (%p2466_p6), %s2155_s27, 4294967168  ;;  %s32_s29 = sadd.s32 1, %s3274_s29   ;;  %s3278_s22 = sld [smem:[#allocation15_spill]] }
 0x945   : > { %p29_p7 = scmp.ge.s32.totalorder %s32_s29, 4   ;;  %s3279_s26 = sld [smem:[#allocation20_spill]] }
 0x946   : > { %s3280_s27 = sld [smem:[#allocation16_spill]]  ;;  %s3282_s24 = smov %s2718_s25 }
 0x947   : > { %s3281_s28 = sld [smem:[#allocation18_spill]]  ;;  %31 = sbr.rel (!%p29_p7) target bundleno = 11 (0xb), region = 140 }
 0x94a   : > { %s3283_s25 = smov %s3278_s22 }
 0x94c   :  { %2160 = vsyncpa [#allocation5], 1 }
 0x94d   :  { %2162 = vsyncpa [#allocation5 + $0x1], 1 }
 0x94e   :  { %2163 = vsyncpa [#allocation8], 1 }
 0x94f   :  { %2164 = vsyncpa [#allocation6], 1 }
 0x950   :  { %2166 = vsyncpa [#allocation6 + $0x1], 1 }

</bundles_post_ra>
